<compile_context>
chip_gen: v7x
topology: tpu7x:2x2x1
jax: 0.10.0
libtpu: 0.0.40
codegen_flags: <defaults>
</compile_context>

<pallas_src>
import functools

import jax
import jax.numpy as jnp
from jax.experimental import pallas as pl
from jax.experimental.pallas import tpu as pltpu

NUM_JOINTS = 5                       # FLAME joints: global, neck, jaw, L-eye, R-eye
PARENTS = [-1, 0, 1, 1, 1]           # kintree_table[0] with parents[0] = -1
N_SHAPE_TOTAL = 300
N_EXPR_TOTAL = 100
NB = N_SHAPE_TOTAL + N_EXPR_TOTAL    # 400 blendshape coefficients
NP_POSE = (NUM_JOINTS - 1) * 9       # 36 pose-corrective features
K_TOTAL = NB + NP_POSE               # 436 combined blendshape + pose basis
K_PAD = 448                          # 436 padded to a multiple of 16 (bf16 sublanes)
TV = 512                             # vertex tile on the lane axis (multiple of 128)


def _group_rows(batch_size):
    """Rows reserved per (k, m) slot of A in the packed skinning matrix (8-aligned)."""
    return 8 * ((batch_size + 7) // 8)


# ----------------------------------------------------------------------------
# Fused Pallas kernel: blendshapes + pose correctives + linear blend skinning
# ----------------------------------------------------------------------------
def _fused_lbs_kernel(bp_ref, vt_ref, dirs_ref, arows_ref, w_ref, out_ref,
                      *, batch, group, tv):
    # 1) blendshape + pose-corrective offsets for all 3 coords in ONE MXU dot.
    #    bp is already bf16 (cast + pad done once in the wrapper).
    offs = jnp.dot(bp_ref[...], dirs_ref[...],
                   preferred_element_type=jnp.float32)              # (B, 3*TV) f32
    vps = [vt_ref[m:m + 1, :] + offs[:, m * tv:(m + 1) * tv]        # posed coord m
           for m in range(3)]

    # 2) skinning.  Per output coordinate k, the per-vertex transform entries
    #    T[b,v,k,m] = sum_j A[b,j,k,m] * W[j,v] come from one small MXU matmul
    #    using the pre-packed A rows ((k,m)-major, 8-sublane-aligned b groups).
    w = w_ref[...]                                                   # (J, TV) f32
    for k in range(3):
        a_k = arows_ref[4 * k * group:4 * (k + 1) * group, :]        # (4*group, J)
        t_k = jnp.dot(a_k, w, preferred_element_type=jnp.float32)    # (4*group, TV)
        acc = t_k[3 * group:3 * group + batch, :]                    # translation
        for m in range(3):
            acc = acc + t_k[m * group:m * group + batch, :] * vps[m]
        out_ref[k] = acc                                             # (B, TV) f32


def fused_lbs(bp, v_template_cm, dirs_tiled, a_rows, lbs_weights_T):
    B = bp.shape[0]
    n_tiles, k_pad, tv3 = dirs_tiled.shape
    tv = tv3 // 3
    V_pad = n_tiles * tv
    group = a_rows.shape[0] // 12

    flops = (2 * B * k_pad * 3 * V_pad           # blendshape / pose matmul
             + 2 * 12 * group * NUM_JOINTS * V_pad   # per-vertex transform matmul
             + 8 * B * 3 * V_pad)                # skinning FMAs
    bytes_accessed = (dirs_tiled.size * dirs_tiled.dtype.itemsize
                      + v_template_cm.size * 4 + lbs_weights_T.size * 4
                      + a_rows.size * 4 + bp.size * bp.dtype.itemsize
                      + 3 * B * V_pad * 4)

    kernel = functools.partial(_fused_lbs_kernel, batch=B, group=group, tv=tv)
    return pl.pallas_call(
        kernel,
        grid=(n_tiles,),
        in_specs=[
            pl.BlockSpec((B, k_pad), lambda v: (0, 0)),              # [betas|pose] bf16
            pl.BlockSpec((3, tv), lambda v: (0, v)),                 # v_template
            # tile-major dirs: one contiguous (K_PAD, 3*TV) bf16 slab per grid step
            pl.BlockSpec((None, k_pad, tv3), lambda v: (v, 0, 0)),
            pl.BlockSpec((12 * group, NUM_JOINTS), lambda v: (0, 0)),  # packed A rows
            pl.BlockSpec((NUM_JOINTS, tv), lambda v: (0, v)),        # lbs weights^T
        ],
        out_specs=pl.BlockSpec((3, B, tv), lambda v: (0, 0, v)),
        out_shape=jax.ShapeDtypeStruct((3, B, V_pad), jnp.float32),
        compiler_params=pltpu.CompilerParams(
            dimension_semantics=("parallel",),           # megacore sharding on v7x
            vmem_limit_bytes=32 * 1024 * 1024),          # safe on v5e / v6e / v7x
        cost_estimate=pl.CostEstimate(flops=flops, transcendentals=0,
                                      bytes_accessed=bytes_accessed),
    )(bp, v_template_cm, dirs_tiled, a_rows, lbs_weights_T)


# ----------------------------------------------------------------------------
# Plain JAX glue (tiny / sequential parts of the FLAME forward)
# ----------------------------------------------------------------------------
def batch_rodrigues(rot_vecs, epsilon=1e-8):
    n = rot_vecs.shape[0]
    angle = jnp.linalg.norm(rot_vecs + epsilon, axis=1, keepdims=True)   # (N,1)
    rot_dir = rot_vecs / angle
    cos = jnp.cos(angle)[:, None]                                        # (N,1,1)
    sin = jnp.sin(angle)[:, None]
    rx, ry, rz = jnp.split(rot_dir, 3, axis=1)
    zeros = jnp.zeros((n, 1), dtype=rot_vecs.dtype)
    K = jnp.concatenate([zeros, -rz, ry, rz, zeros, -rx, -ry, rx, zeros],
                        axis=1).reshape((n, 3, 3))
    ident = jnp.eye(3, dtype=rot_vecs.dtype)[None]
    return ident + sin * K + (1.0 - cos) * jnp.matmul(K, K)


def batch_rigid_transform(rot_mats, joints, parents):
    # rot_mats: (B,J,3,3), joints: (B,J,3)
    B, NJ = joints.shape[:2]
    joints = joints[..., None]                                           # (B,J,3,1)
    rel_joints = jnp.concatenate(
        [joints[:, :1], joints[:, 1:] - joints[:, parents[1:]]], axis=1)

    top = jnp.concatenate([rot_mats, rel_joints], axis=-1)               # (B,J,3,4)
    bottom = jnp.broadcast_to(
        jnp.array([0.0, 0.0, 0.0, 1.0], dtype=rot_mats.dtype), (B, NJ, 1, 4))
    transforms_mat = jnp.concatenate([top, bottom], axis=-2)             # (B,J,4,4)

    # TODO(synk): 5-joint kinematic-chain composition is sequential & tiny — plain JAX.
    chain = [transforms_mat[:, 0]]
    for i in range(1, NJ):
        chain.append(jnp.matmul(chain[parents[i]], transforms_mat[:, i]))
    transforms = jnp.stack(chain, axis=1)                                # (B,J,4,4)

    posed_joints = transforms[:, :, :3, 3]
    joints_h = jnp.concatenate([joints, jnp.zeros_like(joints[:, :, :1])], axis=2)
    tj = jnp.matmul(transforms, joints_h)                                # (B,J,4,1)
    rel_transforms = transforms - jnp.pad(tj, ((0, 0), (0, 0), (0, 0), (3, 0)))
    return posed_joints, rel_transforms


def vertices2landmarks(vertices, faces, lmk_faces_idx, lmk_bary_coords):
    # TODO(synk): landmark gather is tiny (L=8) — kept in plain JAX.
    lmk_faces = faces[lmk_faces_idx]                     # (L,3) vertex ids
    lmk_vertices = vertices[:, lmk_faces, :]             # (B,L,3,3)
    return jnp.einsum('blfi,lf->bli', lmk_vertices, lmk_bary_coords)


def prepare_flame_params(v_template, shapedirs, posedirs_v, J_regressor,
                         lbs_weights, faces, lmk_faces_idx, lmk_bary_coords,
                         constants, tv=TV):
    """Precompute kernel-ready (tile-major / packed / precontracted) buffers."""
    V = v_template.shape[0]
    n_tiles = -(-V // tv)
    V_pad = n_tiles * tv

    # dirs[v, c, k] with k = [shape | expression | pose-corrective], zero-padded
    # along V (to V_pad) and K (436 -> 448 for exact bf16 sublane tiling).
    dirs = jnp.concatenate([shapedirs, posedirs_v], axis=2)              # (V,3,436)
    dirs = jnp.pad(dirs, ((0, V_pad - V), (0, 0), (0, K_PAD - K_TOTAL)))
    # Tile-major relayout (n_tiles, K_PAD, 3*TV): each grid step's dirs block
    # is ONE contiguous HBM slab (~1.4 MB bf16 at TV=512) instead of ~1300
    # strided 1 KB reads — the kernel is DMA-bound so this is the key lever.
    dirs_tiled = jnp.transpose(dirs.reshape(n_tiles, tv, 3, K_PAD), (0, 3, 2, 1))
    dirs_tiled = dirs_tiled.reshape(n_tiles, K_PAD, 3 * tv).astype(jnp.bfloat16)
    # TODO(synk): optional int8 (v5e/v6e) / fp8 (v7x) dirs storage + in-kernel
    # dequant would halve HBM bytes again; skipped pending accuracy re-validation.

    v_template_cm = jnp.pad(v_template, ((0, V_pad - V), (0, 0)))
    lbs_weights_pad = jnp.pad(lbs_weights, ((0, V_pad - V), (0, 0)))     # zero wts for pad

    return {
        'v_template_cm': jnp.transpose(v_template_cm, (1, 0)).astype(jnp.float32),
        'dirs_tiled': dirs_tiled,
        # J_regressor-precontracted template / shape dirs: joints no longer need
        # the per-vertex v_shaped, enabling the fully fused LBS kernel.
        'J_template': J_regressor @ v_template,                              # (J,3)
        'J_shapedirs': jnp.einsum('jv,vkl->jkl', J_regressor, shapedirs),    # (J,3,NB)
        'lbs_weights_T': jnp.transpose(lbs_weights_pad, (1, 0)),             # (J, V_pad)
        'faces': faces,
        'lmk_faces_idx': lmk_faces_idx,
        'lmk_bary_coords': lmk_bary_coords,
        # module parameters (zero buffers, as in __init__)
        'shape_betas': jnp.zeros((1, N_SHAPE_TOTAL - constants['shape']), jnp.float32),
        'expression_betas': jnp.zeros((1, N_EXPR_TOTAL - constants['expression']),
                                      jnp.float32),
        'rot': jnp.zeros((1, 3), jnp.float32),
        'jaw': jnp.zeros((1, 3), jnp.float32),
        'eye_pose': jnp.zeros((1, 6), jnp.float32),
        'neck_pose': jnp.zeros((1, 3), jnp.float32),
    }


def flame_forward(params, batch_size, num_vertices, shape, expression,
                  rotation=None, translation=None, scale=None, jaw=None,
                  eyeballs=None, neck=None):
    p = params

    def expand(buf):
        return jnp.broadcast_to(buf[0:1], (batch_size, buf.shape[1]))

    betas = jnp.concatenate([shape, expand(p['shape_betas']),
                             expression, expand(p['expression_betas'])], axis=1)
    neck_pose = neck if neck is not None else expand(p['neck_pose'])
    eye_pose = eyeballs if eyeballs is not None else expand(p['eye_pose'])
    jaw_pose = jaw if jaw is not None else expand(p['jaw'])
    # Matches the reference module: full_pose = [neck, neck, jaw, eyes];
    # rotation / translation / scale are accepted but unused, as in the torch code.
    full_pose = jnp.concatenate([neck_pose, neck_pose, jaw_pose, eye_pose], axis=1)

    rot_mats = batch_rodrigues(full_pose.reshape(-1, 3)).reshape(
        batch_size, NUM_JOINTS, 3, 3)
    ident = jnp.eye(3, dtype=jnp.float32)
    pose_feature = (rot_mats[:, 1:] - ident).reshape(batch_size, NP_POSE)

    # Joints from the precontracted blendshapes (no per-vertex v_shaped needed).
    joints = p['J_template'][None] + jnp.einsum('bl,jkl->bjk', betas,
                                                p['J_shapedirs'])
    _, A = batch_rigid_transform(rot_mats, joints, PARENTS)

    # Pack A for the in-kernel skinning matmul: row (k*4+m)*group + b = A[b,j,k,m]
    group = _group_rows(batch_size)
    a_km_b = jnp.transpose(A[:, :, :3, :], (2, 3, 0, 1))          # (3, 4, B, J)
    a_rows = jnp.zeros((3, 4, group, NUM_JOINTS), jnp.float32)
    a_rows = a_rows.at[:, :, :batch_size, :].set(a_km_b)
    a_rows = a_rows.reshape(12 * group, NUM_JOINTS)

    # bp = [betas | pose_feature], K-padded + bf16 once here (grid-invariant),
    # so the kernel never re-casts it per grid step.
    bp = jnp.concatenate([betas, pose_feature], axis=1)           # (B, 436)
    bp = jnp.pad(bp, ((0, 0), (0, K_PAD - K_TOTAL))).astype(jnp.bfloat16)

    # --- fused Pallas hot path: blendshapes + pose correctives + skinning ---
    verts_cm = fused_lbs(bp, p['v_template_cm'], p['dirs_tiled'], a_rows,
                         p['lbs_weights_T'])                      # (3, B, V_pad)
    vertices = jnp.transpose(verts_cm, (1, 2, 0))[:, :num_vertices, :]   # (B, V, 3)

    landmarks = vertices2landmarks(vertices, p['faces'], p['lmk_faces_idx'],
                                   p['lmk_bary_coords'])
    return vertices, landmarks


# ----------------------------------------------------------------------------
# Pure-JAX f32 reference (mirrors the torch lbs / vertices2landmarks semantics)
# ----------------------------------------------------------------------------
def lbs_reference(betas, pose, v_template, shapedirs, posedirs_flat,
                  J_regressor, parents, lbs_weights):
    B = betas.shape[0]
    v_shaped = v_template[None] + jnp.einsum('bl,mkl->bmk', betas, shapedirs)
    J = jnp.einsum('bik,ji->bjk', v_shaped, J_regressor)
    rot_mats = batch_rodrigues(pose.reshape(-1, 3)).reshape(B, -1, 3, 3)
    ident = jnp.eye(3, dtype=jnp.float32)
    pose_feature = (rot_mats[:, 1:] - ident).reshape(B, -1)
    pose_offsets = jnp.matmul(pose_feature, posedirs_flat).reshape(B, -1, 3)
    v_posed = v_shaped + pose_offsets
    _, A = batch_rigid_transform(rot_mats, J, parents)
    W = jnp.broadcast_to(lbs_weights[None], (B,) + lbs_weights.shape)
    T = jnp.matmul(W, A.reshape(B, NUM_JOINTS, 16)).reshape(B, -1, 4, 4)
    ones = jnp.ones((B, v_posed.shape[1], 1), dtype=jnp.float32)
    v_posed_h = jnp.concatenate([v_posed, ones], axis=2)
    v_homo = jnp.matmul(T, v_posed_h[..., None])
    return v_homo[:, :, :3, 0]


# ----------------------------------------------------------------------------
if __name__ == "__main__":
    key = jax.random.PRNGKey(0)
    B = 2
    V = 1024         # small synthetic mesh: 2 vertex tiles of TV=512 (parallel grid)
    F = 64           # synthetic faces
    L = 8            # synthetic static landmarks
    constants = {'shape': 8, 'expression': 4}

    ks = jax.random.split(key, 12)
    v_template = 0.1 * jax.random.normal(ks[0], (V, 3), jnp.float32)
    shapedirs = 0.01 * jax.random.normal(ks[1], (V, 3, NB), jnp.float32)
    posedirs_v = 0.01 * jax.random.normal(ks[2], (V, 3, NP_POSE), jnp.float32)
    J_regressor = jax.random.uniform(ks[3], (NUM_JOINTS, V), jnp.float32)
    J_regressor = J_regressor / jnp.sum(J_regressor, axis=1, keepdims=True)
    lbs_weights = jax.random.uniform(ks[4], (V, NUM_JOINTS), jnp.float32)
    lbs_weights = lbs_weights / jnp.sum(lbs_weights, axis=1, keepdims=True)
    faces = jax.random.randint(ks[5], (F, 3), 0, V)
    lmk_faces_idx = jax.random.randint(ks[6], (L,), 0, F)
    lmk_bary = jax.random.uniform(ks[7], (L, 3), jnp.float32)
    lmk_bary = lmk_bary / jnp.sum(lmk_bary, axis=1, keepdims=True)

    # For the real FLAME mesh (V = 5023) use tv=512 (10 balanced tiles on v7x)
    # or tv=1024 (fewer-step overhead on v6e); padding is handled automatically.
    params = prepare_flame_params(v_template, shapedirs, posedirs_v, J_regressor,
                                  lbs_weights, faces, lmk_faces_idx, lmk_bary,
                                  constants, tv=TV)

    # deterministic example inputs
    shape_in = 0.3 * jax.random.normal(ks[8], (B, constants['shape']), jnp.float32)
    expr_in = 0.3 * jax.random.normal(ks[9], (B, constants['expression']), jnp.float32)
    neck_in = 0.2 * jax.random.normal(ks[10], (B, 3), jnp.float32)
    jaw_in = 0.2 * jax.random.normal(ks[11], (B, 3), jnp.float32)

    fwd = jax.jit(flame_forward, static_argnums=(1, 2))
    vertices, landmarks = fwd(params, B, V, shape_in, expr_in, jaw=jaw_in,
                              neck=neck_in)
    jax.block_until_ready((vertices, landmarks))

    # pure-JAX f32 reference check
    betas_ref = jnp.concatenate(
        [shape_in, jnp.zeros((B, N_SHAPE_TOTAL - constants['shape']), jnp.float32),
         expr_in, jnp.zeros((B, N_EXPR_TOTAL - constants['expression']), jnp.float32)],
        axis=1)
    full_pose_ref = jnp.concatenate(
        [neck_in, neck_in, jaw_in, jnp.zeros((B, 6), jnp.float32)], axis=1)
    posedirs_flat = jnp.transpose(posedirs_v.reshape(V * 3, NP_POSE), (1, 0))
    verts_ref = lbs_reference(betas_ref, full_pose_ref, v_template, shapedirs,
                              posedirs_flat, J_regressor, PARENTS, lbs_weights)
    lmk_ref = vertices2landmarks(verts_ref, faces, lmk_faces_idx, lmk_bary)

    assert vertices.shape == (B, V, 3) and landmarks.shape == (B, L, 3)
    # blendshape / pose dirs (and bp) are bf16 in the kernel -> ~1e-3 agreement vs f32
    assert jnp.allclose(vertices, verts_ref, atol=2e-3, rtol=2e-3)
    assert jnp.allclose(landmarks, lmk_ref, atol=2e-3, rtol=2e-3)
    print("KERNEL_OK")
</pallas_src>

<mosaic_0001>
module attributes {stable_mosaic.version = 11 : i64} {
  func.func @_fused_lbs_kernel(%arg0: i32, %arg1: memref<2x448xbf16, #tpu.memory_space<vmem>>, %arg2: memref<3x512xf32, #tpu.memory_space<vmem>>, %arg3: memref<1x448x1536xbf16, #tpu.memory_space<vmem>>, %arg4: memref<96x5xf32, #tpu.memory_space<vmem>>, %arg5: memref<5x512xf32, #tpu.memory_space<vmem>>, %arg6: memref<3x2x512xf32, #tpu.memory_space<vmem>>) attributes {dimension_semantics = [#tpu.dimension_semantics<parallel>], iteration_bounds = array<i64: 2>, scalar_prefetch = 0 : i64, scratch_operands = 0 : i64, tpu.core_type = #tpu.core_type<tc>, window_params = [{pipeline_mode = #tpu.pipeline_mode<synchronous>, transform_indices = @transform_0, window_bounds = array<i64: 2, 448>}, {transform_indices = @transform_1, window_bounds = array<i64: 3, 512>}, {transform_indices = @transform_2, window_bounds = array<i64: 1, 448, 1536>}, {pipeline_mode = #tpu.pipeline_mode<synchronous>, transform_indices = @transform_3, window_bounds = array<i64: 96, 5>}, {transform_indices = @transform_4, window_bounds = array<i64: 5, 512>}, {transform_indices = @transform_5, window_bounds = array<i64: 3, 2, 512>}]} {
    %c0 = arith.constant 0 : index
    %c0_0 = arith.constant 0 : index
    %0 = vector.load %arg1[%c0, %c0_0] : memref<2x448xbf16, #tpu.memory_space<vmem>>, vector<2x448xbf16>
    %c0_1 = arith.constant 0 : index
    %c0_2 = arith.constant 0 : index
    %c0_3 = arith.constant 0 : index
    %1 = vector.load %arg3[%c0_1, %c0_2, %c0_3] : memref<1x448x1536xbf16, #tpu.memory_space<vmem>>, vector<1x448x1536xbf16>
    %2 = vector.shape_cast %1 : vector<1x448x1536xbf16> to vector<448x1536xbf16>
    %cst = arith.constant dense<0.000000e+00> : vector<2x1536xf32>
    %3 = tpu.matmul %0, %2, %cst {dimension_numbers = #tpu.dot_dimension_numbers<[1], [0], [0], [1], [0, 0, 1, 1], [], []>} : vector<2x448xbf16>, vector<448x1536xbf16>, vector<2x1536xf32> -> vector<2x1536xf32>
    %c0_4 = arith.constant 0 : index
    %c0_5 = arith.constant 0 : index
    %4 = vector.load %arg2[%c0_4, %c0_5] : memref<3x512xf32, #tpu.memory_space<vmem>>, vector<1x512xf32>
    %5 = vector.extract_strided_slice %3 {offsets = [0, 0], sizes = [2, 512], strides = [1, 1]} : vector<2x1536xf32> to vector<2x512xf32>
    %6 = vector.broadcast %4 : vector<1x512xf32> to vector<2x512xf32>
    %7 = arith.addf %6, %5 : vector<2x512xf32>
    %c1 = arith.constant 1 : index
    %c0_6 = arith.constant 0 : index
    %8 = vector.load %arg2[%c1, %c0_6] : memref<3x512xf32, #tpu.memory_space<vmem>>, vector<1x512xf32>
    %9 = vector.extract_strided_slice %3 {offsets = [0, 512], sizes = [2, 512], strides = [1, 1]} : vector<2x1536xf32> to vector<2x512xf32>
    %10 = vector.broadcast %8 : vector<1x512xf32> to vector<2x512xf32>
    %11 = arith.addf %10, %9 : vector<2x512xf32>
    %c2 = arith.constant 2 : index
    %c0_7 = arith.constant 0 : index
    %12 = vector.load %arg2[%c2, %c0_7] : memref<3x512xf32, #tpu.memory_space<vmem>>, vector<1x512xf32>
    %13 = vector.extract_strided_slice %3 {offsets = [0, 1024], sizes = [2, 512], strides = [1, 1]} : vector<2x1536xf32> to vector<2x512xf32>
    %14 = vector.broadcast %12 : vector<1x512xf32> to vector<2x512xf32>
    %15 = arith.addf %14, %13 : vector<2x512xf32>
    %c0_8 = arith.constant 0 : index
    %c0_9 = arith.constant 0 : index
    %16 = vector.load %arg5[%c0_8, %c0_9] : memref<5x512xf32, #tpu.memory_space<vmem>>, vector<5x512xf32>
    %c0_10 = arith.constant 0 : index
    %c0_11 = arith.constant 0 : index
    %17 = vector.load %arg4[%c0_10, %c0_11] : memref<96x5xf32, #tpu.memory_space<vmem>>, vector<32x5xf32>
    %cst_12 = arith.constant dense<0.000000e+00> : vector<32x512xf32>
    %18 = tpu.matmul %17, %16, %cst_12 {dimension_numbers = #tpu.dot_dimension_numbers<[1], [0], [0], [1], [0, 0, 1, 1], [], []>} : vector<32x5xf32>, vector<5x512xf32>, vector<32x512xf32> -> vector<32x512xf32>
    %19 = vector.extract_strided_slice %18 {offsets = [24, 0], sizes = [2, 512], strides = [1, 1]} : vector<32x512xf32> to vector<2x512xf32>
    %20 = vector.extract_strided_slice %18 {offsets = [0, 0], sizes = [2, 512], strides = [1, 1]} : vector<32x512xf32> to vector<2x512xf32>
    %21 = arith.mulf %20, %7 : vector<2x512xf32>
    %22 = arith.addf %19, %21 : vector<2x512xf32>
    %23 = vector.extract_strided_slice %18 {offsets = [8, 0], sizes = [2, 512], strides = [1, 1]} : vector<32x512xf32> to vector<2x512xf32>
    %24 = arith.mulf %23, %11 : vector<2x512xf32>
    %25 = arith.addf %22, %24 : vector<2x512xf32>
    %26 = vector.extract_strided_slice %18 {offsets = [16, 0], sizes = [2, 512], strides = [1, 1]} : vector<32x512xf32> to vector<2x512xf32>
    %27 = arith.mulf %26, %15 : vector<2x512xf32>
    %28 = arith.addf %25, %27 : vector<2x512xf32>
    %c0_13 = arith.constant 0 : index
    %c0_14 = arith.constant 0 : index
    %c0_15 = arith.constant 0 : index
    %29 = vector.load %arg6[%c0_13, %c0_14, %c0_15] : memref<3x2x512xf32, #tpu.memory_space<vmem>>, vector<1x2x512xf32>
    %30 = vector.shape_cast %29 : vector<1x2x512xf32> to vector<2x512xf32>
    %31 = vector.shape_cast %28 : vector<2x512xf32> to vector<1x2x512xf32>
    tpu.vector_store %arg6[%c0_13, %c0_14, %c0_15], %31 {strides = array<i32>} : memref<3x2x512xf32, #tpu.memory_space<vmem>>, vector<1x2x512xf32>,
    %c32 = arith.constant 32 : index
    %c0_16 = arith.constant 0 : index
    %32 = vector.load %arg4[%c32, %c0_16] : memref<96x5xf32, #tpu.memory_space<vmem>>, vector<32x5xf32>
    %cst_17 = arith.constant dense<0.000000e+00> : vector<32x512xf32>
    %33 = tpu.matmul %32, %16, %cst_17 {dimension_numbers = #tpu.dot_dimension_numbers<[1], [0], [0], [1], [0, 0, 1, 1], [], []>} : vector<32x5xf32>, vector<5x512xf32>, vector<32x512xf32> -> vector<32x512xf32>
    %34 = vector.extract_strided_slice %33 {offsets = [24, 0], sizes = [2, 512], strides = [1, 1]} : vector<32x512xf32> to vector<2x512xf32>
    %35 = vector.extract_strided_slice %33 {offsets = [0, 0], sizes = [2, 512], strides = [1, 1]} : vector<32x512xf32> to vector<2x512xf32>
    %36 = arith.mulf %35, %7 : vector<2x512xf32>
    %37 = arith.addf %34, %36 : vector<2x512xf32>
    %38 = vector.extract_strided_slice %33 {offsets = [8, 0], sizes = [2, 512], strides = [1, 1]} : vector<32x512xf32> to vector<2x512xf32>
    %39 = arith.mulf %38, %11 : vector<2x512xf32>
    %40 = arith.addf %37, %39 : vector<2x512xf32>
    %41 = vector.extract_strided_slice %33 {offsets = [16, 0], sizes = [2, 512], strides = [1, 1]} : vector<32x512xf32> to vector<2x512xf32>
    %42 = arith.mulf %41, %15 : vector<2x512xf32>
    %43 = arith.addf %40, %42 : vector<2x512xf32>
    %c1_18 = arith.constant 1 : index
    %c0_19 = arith.constant 0 : index
    %c0_20 = arith.constant 0 : index
    %44 = vector.load %arg6[%c1_18, %c0_19, %c0_20] : memref<3x2x512xf32, #tpu.memory_space<vmem>>, vector<1x2x512xf32>
    %45 = vector.shape_cast %44 : vector<1x2x512xf32> to vector<2x512xf32>
    %46 = vector.shape_cast %43 : vector<2x512xf32> to vector<1x2x512xf32>
    tpu.vector_store %arg6[%c1_18, %c0_19, %c0_20], %46 {strides = array<i32>} : memref<3x2x512xf32, #tpu.memory_space<vmem>>, vector<1x2x512xf32>,
    %c64 = arith.constant 64 : index
    %c0_21 = arith.constant 0 : index
    %47 = vector.load %arg4[%c64, %c0_21] : memref<96x5xf32, #tpu.memory_space<vmem>>, vector<32x5xf32>
    %cst_22 = arith.constant dense<0.000000e+00> : vector<32x512xf32>
    %48 = tpu.matmul %47, %16, %cst_22 {dimension_numbers = #tpu.dot_dimension_numbers<[1], [0], [0], [1], [0, 0, 1, 1], [], []>} : vector<32x5xf32>, vector<5x512xf32>, vector<32x512xf32> -> vector<32x512xf32>
    %49 = vector.extract_strided_slice %48 {offsets = [24, 0], sizes = [2, 512], strides = [1, 1]} : vector<32x512xf32> to vector<2x512xf32>
    %50 = vector.extract_strided_slice %48 {offsets = [0, 0], sizes = [2, 512], strides = [1, 1]} : vector<32x512xf32> to vector<2x512xf32>
    %51 = arith.mulf %50, %7 : vector<2x512xf32>
    %52 = arith.addf %49, %51 : vector<2x512xf32>
    %53 = vector.extract_strided_slice %48 {offsets = [8, 0], sizes = [2, 512], strides = [1, 1]} : vector<32x512xf32> to vector<2x512xf32>
    %54 = arith.mulf %53, %11 : vector<2x512xf32>
    %55 = arith.addf %52, %54 : vector<2x512xf32>
    %56 = vector.extract_strided_slice %48 {offsets = [16, 0], sizes = [2, 512], strides = [1, 1]} : vector<32x512xf32> to vector<2x512xf32>
    %57 = arith.mulf %56, %15 : vector<2x512xf32>
    %58 = arith.addf %55, %57 : vector<2x512xf32>
    %c2_23 = arith.constant 2 : index
    %c0_24 = arith.constant 0 : index
    %c0_25 = arith.constant 0 : index
    %59 = vector.load %arg6[%c2_23, %c0_24, %c0_25] : memref<3x2x512xf32, #tpu.memory_space<vmem>>, vector<1x2x512xf32>
    %60 = vector.shape_cast %59 : vector<1x2x512xf32> to vector<2x512xf32>
    %61 = vector.shape_cast %58 : vector<2x512xf32> to vector<1x2x512xf32>
    tpu.vector_store %arg6[%c2_23, %c0_24, %c0_25], %61 {strides = array<i32>} : memref<3x2x512xf32, #tpu.memory_space<vmem>>, vector<1x2x512xf32>,
    return
  }
  func.func @transform_0(%arg0: i32) -> (i32, i32) {
    %c0_i32 = arith.constant 0 : i32
    %c0_i32_0 = arith.constant 0 : i32
    %c0_i32_1 = arith.constant 0 : i32
    return %c0_i32, %c0_i32_0 : i32, i32
  }
  func.func @transform_1(%arg0: i32) -> (i32, i32) {
    %c0_i32 = arith.constant 0 : i32
    %c0_i32_0 = arith.constant 0 : i32
    return %c0_i32, %arg0 : i32, i32
  }
  func.func @transform_2(%arg0: i32) -> (i32, i32, i32) {
    %c0_i32 = arith.constant 0 : i32
    %c0_i32_0 = arith.constant 0 : i32
    %c0_i32_1 = arith.constant 0 : i32
    return %arg0, %c0_i32, %c0_i32_0 : i32, i32, i32
  }
  func.func @transform_3(%arg0: i32) -> (i32, i32) {
    %c0_i32 = arith.constant 0 : i32
    %c0_i32_0 = arith.constant 0 : i32
    %c0_i32_1 = arith.constant 0 : i32
    return %c0_i32, %c0_i32_0 : i32, i32
  }
  func.func @transform_4(%arg0: i32) -> (i32, i32) {
    %c0_i32 = arith.constant 0 : i32
    %c0_i32_0 = arith.constant 0 : i32
    return %c0_i32, %arg0 : i32, i32
  }
  func.func @transform_5(%arg0: i32) -> (i32, i32, i32) {
    %c0_i32 = arith.constant 0 : i32
    %c0_i32_0 = arith.constant 0 : i32
    %c0_i32_1 = arith.constant 0 : i32
    return %c0_i32, %c0_i32_0, %arg0 : i32, i32, i32
  }
}

</mosaic_0001>

<bundles_post_ra>
// kernel: flame_forward.1
= control target key start
LH: loop header
LB: loop body
LE: loop exit
PB: predicated region body
PF: predicated region fallthrough
CT: control target
= control target key end

     0   :  { %10 = vsyncpa [#allocation3], 0  ;;  %s5740_s0 = inlined_call_operand.vmem [shape: bf16[2,448], index: 0, kind: input, shape index: {}]   ;;  %s5741_s1 = inlined_call_operand.hbm [shape: f32[3,1024], index: 1, kind: input, shape index: {}]   ;;  %s5742_s2 = inlined_call_operand.hbm [shape: bf16[2,448,1536], index: 2, kind: input, shape index: {}]   ;;  %s5743_s3 = inlined_call_operand.vmem [shape: f32[96,5], index: 3, kind: input, shape index: {}]   ;;  %s5744_s4 = inlined_call_operand.hbm [shape: f32[5,1024], index: 4, kind: input, shape index: {}]   ;;  %s5745_s5 = inlined_call_operand.vmem [shape: f32[3,2,1024], index: 5, kind: output, shape index: {}]  }
   0x1   :  { %12 = vsyncpa [#allocation3 + $0x1], 0 }
   0x2   :  { %13 = vsyncpa [#allocation5], 0 }
   0x3   :  { %15 = vsyncpa [#allocation5 + $0x1], 0  ;;  %s4968_s18 = smov 0   ;;  %s4970_s19 = smov 0  }
   0x4   :  { %s4972_s20 = smov 0   ;;  %s4974_s21 = smov 0  }
   0x5 LB: > { %s4987_s22 = sadd.s32 4294967295, %s4928_s21   ;;  %s4990_s23 = sadd.s32 1, %s4928_s21   ;;  %s4928_s21 = sphi %s4974_s21, %s5762_s21   ;;  %s4924_s20 = sphi %s4972_s20, %s5761_s20   ;;  %s4920_s19 = sphi %s4970_s19, %s5760_s19   ;;  %s4916_s18 = sphi %s4968_s18, %s5759_s18  }
   0x6   : > { %s46_s24 = ssub.s32 %s4928_s21, %s4990_s23  ;;  %s49_s25 = sadd.s32 1, %s4924_s20 }
   0x7   : > { %p47_p0 = scmp.eq.s32.totalorder %s46_s24, 0  ;;  %p56_p1 = scmp.ne.s32.totalorder %s4924_s20, %s4920_s19 }
   0x8   : > { %p57_p2 = scmp.eq.s32.totalorder %s4928_s21, 0  ;;  %p62_p3 = scmp.ne.s32.totalorder %s4920_s19, %s4916_s18 }
   0x9   : > { %s5000_s26 = scalar_select %p47_p0, %s4924_s20, %s49_s25  }
   0xa   : > { %p58_p4 = por %p57_p2, %p56_p1  ;;  %p63_p5 = scmp.eq.s32.totalorder %s4987_s22, 0 }
   0xb   : > { %p159_p6 = scmp.eq.s32.totalorder %s4987_s22, 1  ;;  %p4258_p8 = scmp.lt.s32.totalorder %s4928_s21, 2 }
   0xc   : > { %p5004_p7 = por %p63_p5, %p62_p3  ;;  %s5014_s29 = sand.u32 1, %s4924_s20  }
   0xd   : > { %p5009_p9 = por %p159_p6, %p56_p1  ;;  %p5016_p10 = pnand %p4258_p8, %p58_p4 }
   0xe   : > { %s5749_s27 = scalar_select %p5004_p7, 1, 0 }
   0xf   : > { %s5750_s28 = scalar_select %p5009_p9, 1, 0 }
  0x10   : > { %s5751_s30 = scalar_select %p5016_p10, 1, 0 }
  0x11   : > { %s210_s6 = sand.u32 1, %s4928_s21   ;;  %s4238_s7 = smul.u32 2688, %s5014_s29 }
  0x12   : > { %s4239_s8 = smul.u32 43008, %s4928_s21  ;;  %s5030_s14 = scalar_lea.sflag [#allocation5], %s210_s6 }
  0x13   : > { %s214_s12 = scalar_lea.vmem [#allocation4], %s4238_s7  ;;  %p5036_p12 = pneg %p5016_p10 }
  0x14   : > { %s5026_s11 = scalar_lea.hbm %s5742_s2, %s4239_s8  ;;  %s221_s13 = sshll.u32 %s214_s12, 4  ;;  %s5028_s13 = int_to_ptr.vmem [resolvable:$true] %s221_s13 }
  0x15   : > { %s4800_s15 = scalar_lea.hbm %s5026_s11, 43008  ;;  %s4805_s24 = scalar_lea.hbm %s5742_s2, 86016 }
  0x16   : > { %p4801_p11 = scmp.ne.s32.totalorder %s5026_s11, %s4800_s15  ;;  %p4806_p1 = scmp.lt.u32.totalorder %s5026_s11, %s5742_s2 }
  0x17   : > { %p4807_p2 = scmp.lt.u32.totalorder %s4805_s24, %s4800_s15  ;;  %p4809_p4 = scmp.lt.u32.totalorder %s4800_s15, %s5026_s11 }
  0x18   : > { %p4803_p13 = pnand %p5036_p12, %p4801_p11 }
  0x19   : > { %p4808_p3 = por %p4807_p2, %p4806_p1 }
  0x1a   : > { %p4804_p0 = pneg %p4803_p13 }
  0x1b   : > { %p4810_p5 = por %p4809_p4, %p4808_p3 }
  0x1d   : > { %p4811_p6 = pnand %p4810_p5, %p4804_p0 }
  0x1f   : > { %4814 = shalt.err (!%p4811_p6)
}
  0x20   : > { %s4815_s6 = scalar_lea.vmem %s5028_s13, 43008  ;;  %s4930_s8 = smov [#allocation4]  }
  0x21   : > { %p4816_p8 = scmp.ne.s32.totalorder %s5028_s13, %s4815_s6  ;;  %s4820_s9 = sshll.u32 %s4930_s8, 4  ;;  %s4821_s9 = int_to_ptr.vmem [resolvable:$false] %s4820_s9 }
  0x22   : > { %s4822_s10 = scalar_lea.vmem %s4821_s9, 86016  ;;  %p4823_p9 = scmp.lt.s32.totalorder %s5028_s13, %s4821_s9 }
  0x23   : > { %p4818_p11 = pnand %p4816_p8, %p5036_p12  ;;  %p4824_p7 = scmp.lt.s32.totalorder %s4822_s10, %s4815_s6 }
  0x25   : > { %p4819_p13 = pneg %p4818_p11  ;;  %p4825_p1 = por %p4824_p7, %p4823_p9 }
  0x27   : > { %p4826_p2 = pnand %p4825_p1, %p4819_p13 }
  0x29   : > { %4829 = shalt.err (!%p4826_p2)
}
  0x2a   : > { %s4931_s12 = smov 768   ;;  %s4932_s15 = smov 48  }
  0x2b   : > { %4254 = dma.hbm_to_vmem [thread:$0]  (!%p5016_p10), %s5026_s11, 43008, %s5028_s13, %s5030_s14, %s4931_s12, %s4931_s12, %s4932_s15  }
  0x2c   : > { %p3845_p0 = scmp.ge.s32.totalorder %s4928_s21, 1  ;;  %p248_p3 = scmp.lt.s32.totalorder %s4928_s21, 3 }
  0x2d   : > { %s3838_s17 = sshll.u32 %s5014_s29, 4  ;;  %s4235_s24 = sshll.u32 %s4928_s21, 8 }
  0x2e   : > { %p5063_p7 = pnand %p3845_p0, %p248_p3  ;;  %s195_s25 = scalar_lea.vmem [#allocation2], %s3838_s17 }
  0x2f   : > { %s203_s7 = sshll.u32 %s195_s25, 4  ;;  %s5071_s9 = scalar_lea.hbm %s5741_s1, %s4235_s24  ;;  %s204_s7 = int_to_ptr.vmem [resolvable:$true] %s203_s7 }
  0x30   : > { %s5753_s18 = scalar_select %p5063_p7, 1, 0 }
  0x31   : > { %s192_s11 = scalar_lea.sflag [#allocation3], %s5014_s29  ;;  %s4830_s13 = scalar_lea.hbm %s5071_s9, 256 }
  0x32   : > { %p4831_p9 = scmp.ne.s32.totalorder %s5071_s9, %s4830_s13  ;;  %s4835_s15 = scalar_lea.hbm %s5741_s1, 512 }
  0x33   : > { %p4836_p6 = scmp.lt.u32.totalorder %s5071_s9, %s5741_s1  ;;  %p4837_p8 = scmp.lt.u32.totalorder %s4835_s15, %s4830_s13 }
  0x34   : > { %p4833_p4 = pnand %p4831_p9, %p5036_p12  ;;  %p4839_p13 = scmp.lt.u32.totalorder %s4830_s13, %s5071_s9 }
  0x35   : > { %p4838_p11 = por %p4837_p8, %p4836_p6 }
  0x36   : > { %p4834_p5 = pneg %p4833_p4 }
  0x37   : > { %p4840_p1 = por %p4839_p13, %p4838_p11 }
  0x39   : > { %p4841_p2 = pnand %p4840_p1, %p4834_p5 }
  0x3b   : > { %4844 = shalt.err (!%p4841_p2)
}
  0x3c   : > { %s4845_s24 = scalar_lea.vmem %s204_s7, 256  ;;  %s4933_s6 = smov [#allocation2]  }
  0x3d   : > { %p4846_p0 = scmp.ne.s32.totalorder %s204_s7, %s4845_s24  ;;  %s4850_s8 = sshll.u32 %s4933_s6, 4  ;;  %s4851_s8 = int_to_ptr.vmem [resolvable:$false] %s4850_s8 }
  0x3e   : > { %s4852_s10 = scalar_lea.vmem %s4851_s8, 512  ;;  %p4853_p4 = scmp.lt.s32.totalorder %s204_s7, %s4851_s8 }
  0x3f   : > { %p4848_p3 = pnand %p4846_p0, %p5036_p12  ;;  %p4854_p7 = scmp.lt.s32.totalorder %s4852_s10, %s4845_s24 }
  0x41   : > { %p4849_p9 = pneg %p4848_p3  ;;  %p4855_p10 = por %p4854_p7, %p4853_p4 }
  0x43   : > { %p4856_p6 = pnand %p4855_p10, %p4849_p9 }
  0x45   : > { %4859 = shalt.err (!%p4856_p6)
}
  0x46   : > { %p5754_p8 = scmp.ne.s32.totalorder %s5751_s30, 0  ;;  %s3842_s13 = sshll.u32 %s5014_s29, 5 }
  0x47   : > { %s4236_s12 = sshll.u32 %s4928_s21, 9  ;;  %s235_s24 = scalar_lea.vmem [#allocation6], %s3842_s13 }
  0x48   : > { %4251 = dma.hbm_to_vmem [thread:$0]  (!%p5754_p8), %s5071_s9, 256, %s204_s7, %s192_s11  }
  0x49   : > { %s5096_s25 = scalar_lea.hbm %s5744_s4, %s4236_s12  ;;  %s243_s6 = sshll.u32 %s235_s24, 4  ;;  %s244_s6 = int_to_ptr.vmem [resolvable:$true] %s243_s6 }
  0x4a   : > { %s4860_s8 = scalar_lea.hbm %s5096_s25, 512  ;;  %s4865_s21 = scalar_lea.hbm %s5744_s4, 1024 }
  0x4b   : > { %p4861_p10 = scmp.ne.s32.totalorder %s5096_s25, %s4860_s8  ;;  %p4866_p11 = scmp.lt.u32.totalorder %s5096_s25, %s5744_s4 }
  0x4c   : > { %p4867_p13 = scmp.lt.u32.totalorder %s4865_s21, %s4860_s8  ;;  %p4869_p2 = scmp.lt.u32.totalorder %s4860_s8, %s5096_s25 }
  0x4d   : > { %p4863_p7 = pnand %p4861_p10, %p5036_p12 }
  0x4e   : > { %p4868_p1 = por %p4867_p13, %p4866_p11 }
  0x4f   : > { %p4864_p5 = pneg %p4863_p7 }
  0x50   : > { %p4870_p0 = por %p4869_p2, %p4868_p1 }
  0x52   : > { %p4871_p3 = pnand %p4870_p0, %p4864_p5 }
  0x54   : > { %4874 = shalt.err (!%p4871_p3)
}
  0x55   : > { %s4875_s10 = scalar_lea.vmem %s244_s6, 512  ;;  %s4934_s13 = smov [#allocation6]  }
  0x56   : > { %p4876_p9 = scmp.ne.s32.totalorder %s244_s6, %s4875_s10  ;;  %s4880_s12 = sshll.u32 %s4934_s13, 4  ;;  %s4881_s12 = int_to_ptr.vmem [resolvable:$false] %s4880_s12 }
  0x57   : > { %s4882_s15 = scalar_lea.vmem %s4881_s12, 1024  ;;  %p4883_p10 = scmp.lt.s32.totalorder %s244_s6, %s4881_s12 }
  0x58   : > { %p4878_p4 = pnand %p4876_p9, %p5036_p12  ;;  %p4884_p7 = scmp.lt.s32.totalorder %s4882_s15, %s4875_s10 }
  0x5a   : > { %p4879_p6 = pneg %p4878_p4  ;;  %p4885_p8 = por %p4884_p7, %p4883_p10 }
  0x5c   : > { %p4886_p11 = pnand %p4885_p8, %p4879_p6 }
  0x5e   : > { %4889 = shalt.err (!%p4886_p11)
}
  0x5f   : > { %p5755_p13 = scmp.ne.s32.totalorder %s5751_s30, 0  ;;  %p5756_p5 = scmp.ne.s32.totalorder %s5753_s18, 0 }
  0x60   : > { %s5119_s16 = sand.u32 (!%p5756_p5), 1, %s4920_s19   ;;  %p5757_p12 = scmp.ne.s32.totalorder (!%p5756_p5), %s5749_s27, 0 }
  0x61   : > { %4257 = dma.hbm_to_vmem [thread:$0]  (!%p5755_p13), %s5096_s25, 512, %s244_s6, %s5030_s14  }
  0x62   : > { %252 = sbr.rel (%p5756_p5) target bundleno = 734 (0x2de), region = 40  ;;  %s3846_s17 = sshll.u32 (!%p5756_p5), %s5119_s16, 4 }
  0x63   : > { %s255_s24 = scalar_lea.sflag (!%p5756_p5), [#allocation3], %s5119_s16  ;;  %s5123_s8 = scalar_lea.vmem (!%p5756_p5), [#allocation2], %s3846_s17 }
  0x69   : > { %4907 = dma.done.wait (%p5757_p12), %s255_s24, 256  }
  0x6a   : > { %4909 = vsyncadd (%p5757_p12), %s255_s24, 4294967040  ;;  %s263_s30 = sand.u32 1, %s4987_s22   ;;  %s4240_s14 = smul.u32 2688, %s5119_s16 }
  0x6b   : > { %s264_s18 = scalar_lea.sflag [#allocation5], %s263_s30 }
  0x6c   : > { %s5131_s25 = scalar_lea.vmem [#allocation4], %s4240_s14 }
  0x6d   : > { %4911 = dma.done.wait (%p5757_p12), %s264_s18, 43520  }
  0x6e   : > { %4913 = vsyncadd (%p5757_p12), %s264_s18, 4294923776  ;;  %v4296_v0 = vld [vmem:[%s5131_s25 + $0x4] ss:$48 sps:$4 sm:$0xff]   ;;  %v4300_v2 = vld [vmem:[%s5131_s25] ss:$48 sps:$4 sm:$0xff]   ;;  %v665_v30 = vlaneseq  ;;  %vm2361_vm0 = vcmask 523264  }
  0x6f   : > { %v4298_v1 = vld [vmem:[%s5131_s25 + $0x604] ss:$48 sps:$4 sm:$0xff]   ;;  %2365 = vmatprep.subr.bf16.mxu0 %v4296_v0  ;;  %v4301_v3 = vld [vmem:[%s5131_s25 + $0x600] ss:$48 sps:$4 sm:$0xff]   ;;  %v4935_v28 = vmov 1966171168  }
  0x70   : > { %2406 = vmatprep.subr.bf16.mxu1 %v4298_v1  ;;  %v4302_v4 = vld [vmem:[%s5131_s25 + $0x64] ss:$48 sps:$4 sm:$0xff]   ;;  %2366 = vmatpush1.bf16.msra.mxu0 %v4300_v2  ;;  %v4306_v6 = vld [vmem:[%s5131_s25 + $0x60] ss:$48 sps:$4 sm:$0xff]   ;;  %v663_v29 = vunpack.c.l.s4 %v4935_v28  ;;  %v5168_v35 = vshrl.u32 %v665_v30, 7  ;;  %s3847_s7 = sshll.u32 %s5119_s16, 5 }
  0x71   : > { %2407 = vmatpush1.bf16.msra.mxu1 %v4301_v3  ;;  %v4304_v5 = vld [vmem:[%s5131_s25 + $0x664] ss:$48 sps:$4 sm:$0xff]   ;;  %2367 = vmatprep.subr.bf16.mxu0 %v4302_v4  ;;  %v4307_v7 = vld [vmem:[%s5131_s25 + $0x660] ss:$48 sps:$4 sm:$0xff]   ;;  %v4372_v60 = vld [vmem:[%s5131_s25 + $0xc] ss:$48 sps:$4 sm:$0xff]  }
  0x72   : > { %2408 = vmatprep.subr.bf16.mxu1 %v4304_v5  ;;  %v4308_v8 = vld [vmem:[%s5131_s25 + $0xc4] ss:$48 sps:$4 sm:$0xff]   ;;  %v4312_v10 = vld [vmem:[%s5131_s25 + $0xc0] ss:$48 sps:$4 sm:$0xff]   ;;  %v664_v34 = vunpack.c.0.s8 %v663_v29  ;;  %v4370_v62 = vld [vmem:[%s5131_s25 + $0x8] ss:$48 sps:$4 sm:$0xff]  }
  0x73   : > { %v4310_v9 = vld [vmem:[%s5131_s25 + $0x6c4] ss:$48 sps:$4 sm:$0xff]   ;;  %v4313_v11 = vld [vmem:[%s5131_s25 + $0x6c0] ss:$48 sps:$4 sm:$0xff]   ;;  %v4378_v1 = vld [vmem:[%s5131_s25 + $0x6c] ss:$48 sps:$4 sm:$0xff]  }
  0x74   : > { %2368 = vmatpush1.bf16.msra.mxu0 %v4306_v6  ;;  %v4314_v12 = vld [vmem:[%s5131_s25 + $0x124] ss:$48 sps:$4 sm:$0xff]   ;;  %v4318_v14 = vld [vmem:[%s5131_s25 + $0x120] ss:$48 sps:$4 sm:$0xff]   ;;  %v667_v42 = vsub.s32 %v664_v34, %v5168_v35  ;;  %v4376_v2 = vld [vmem:[%s5131_s25 + $0x68] ss:$48 sps:$4 sm:$0xff]  }
  0x75   : > { %2409 = vmatpush1.bf16.msra.mxu1 %v4307_v7  ;;  %2369 = vmatprep.subr.bf16.mxu0 %v4308_v8  ;;  %v4316_v13 = vld [vmem:[%s5131_s25 + $0x724] ss:$48 sps:$4 sm:$0xff]   ;;  %v4319_v15 = vld [vmem:[%s5131_s25 + $0x720] ss:$48 sps:$4 sm:$0xff]   ;;  %v4384_v5 = vld [vmem:[%s5131_s25 + $0xcc] ss:$48 sps:$4 sm:$0xff]  }
  0x76   : > { %2410 = vmatprep.subr.bf16.mxu1 %v4310_v9  ;;  %v4320_v16 = vld [vmem:[%s5131_s25 + $0x184] ss:$48 sps:$4 sm:$0xff]   ;;  %v4324_v18 = vld [vmem:[%s5131_s25 + $0x180] ss:$48 sps:$4 sm:$0xff]   ;;  %v4382_v6 = vld [vmem:[%s5131_s25 + $0xc8] ss:$48 sps:$4 sm:$0xff]  }
  0x77   : > { %v4322_v17 = vld [vmem:[%s5131_s25 + $0x784] ss:$48 sps:$4 sm:$0xff]   ;;  %v4325_v19 = vld [vmem:[%s5131_s25 + $0x780] ss:$48 sps:$4 sm:$0xff]   ;;  %v4390_v9 = vld [vmem:[%s5131_s25 + $0x12c] ss:$48 sps:$4 sm:$0xff]  }
  0x78   : > { %2370 = vmatpush1.bf16.msra.mxu0 %v4312_v10  ;;  %v4326_v20 = vld [vmem:[%s5131_s25 + $0x1e4] ss:$48 sps:$4 sm:$0xff]   ;;  %v4330_v22 = vld [vmem:[%s5131_s25 + $0x1e0] ss:$48 sps:$4 sm:$0xff]   ;;  %v4388_v10 = vld [vmem:[%s5131_s25 + $0x128] ss:$48 sps:$4 sm:$0xff]  }
  0x79   : > { %2411 = vmatpush1.bf16.msra.mxu1 %v4313_v11  ;;  %2371 = vmatprep.subr.bf16.mxu0 %v4314_v12  ;;  %v4328_v21 = vld [vmem:[%s5131_s25 + $0x7e4] ss:$48 sps:$4 sm:$0xff]   ;;  %v4331_v23 = vld [vmem:[%s5131_s25 + $0x7e0] ss:$48 sps:$4 sm:$0xff]   ;;  %v4394_v12 = vld [vmem:[%s5131_s25 + $0x18c] ss:$48 sps:$4 sm:$0xff]  }
  0x7a   : > { %2412 = vmatprep.subr.bf16.mxu1 %v4316_v13  ;;  %v4332_v24 = vld [vmem:[%s5131_s25 + $0x244] ss:$48 sps:$4 sm:$0xff]   ;;  %v4336_v26 = vld [vmem:[%s5131_s25 + $0x240] ss:$48 sps:$4 sm:$0xff]   ;;  %v4397_v13 = vld [vmem:[%s5131_s25 + $0x60c] ss:$48 sps:$4 sm:$0xff]  }
  0x7b   : > { %v4334_v25 = vld [vmem:[%s5131_s25 + $0x844] ss:$48 sps:$4 sm:$0xff]   ;;  %v4337_v27 = vld [vmem:[%s5131_s25 + $0x840] ss:$48 sps:$4 sm:$0xff]   ;;  %v4418_v28 = vld [vmem:[%s5131_s25 + $0x30c] ss:$48 sps:$4 sm:$0xff]  }
  0x7c   : > { %2372 = vmatpush1.bf16.msra.mxu0 %v4318_v14  ;;  %v4338_v31 = vld [vmem:[%s5131_s25 + $0x2a4] ss:$48 sps:$4 sm:$0xff]   ;;  %v4342_v33 = vld [vmem:[%s5131_s25 + $0x2a0] ss:$48 sps:$4 sm:$0xff]   ;;  %v4392_v14 = vld [vmem:[%s5131_s25 + $0x188] ss:$48 sps:$4 sm:$0xff]  }
  0x7d   : > { %2413 = vmatpush1.bf16.msra.mxu1 %v4319_v15  ;;  %2373 = vmatprep.subr.bf16.mxu0 %v4320_v16  ;;  %v4340_v32 = vld [vmem:[%s5131_s25 + $0x8a4] ss:$48 sps:$4 sm:$0xff]   ;;  %v4343_v36 = vld [vmem:[%s5131_s25 + $0x8a0] ss:$48 sps:$4 sm:$0xff]   ;;  %v4395_v15 = vld [vmem:[%s5131_s25 + $0x608] ss:$48 sps:$4 sm:$0xff]  }
  0x7e   : > { %2414 = vmatprep.subr.bf16.mxu1 %v4322_v17  ;;  %v4344_v37 = vld [vmem:[%s5131_s25 + $0x304] ss:$48 sps:$4 sm:$0xff]   ;;  %v4348_v39 = vld [vmem:[%s5131_s25 + $0x300] ss:$48 sps:$4 sm:$0xff]   ;;  %v4400_v16 = vld [vmem:[%s5131_s25 + $0x1ec] ss:$48 sps:$4 sm:$0xff]  }
  0x7f   : > { %v4346_v38 = vld [vmem:[%s5131_s25 + $0x904] ss:$48 sps:$4 sm:$0xff]   ;;  %v4349_v40 = vld [vmem:[%s5131_s25 + $0x900] ss:$48 sps:$4 sm:$0xff]   ;;  %v4403_v17 = vld [vmem:[%s5131_s25 + $0x66c] ss:$48 sps:$4 sm:$0xff]  }
  0x80   : > { %2374 = vmatpush1.bf16.msra.mxu0 %v4324_v18  ;;  %v4350_v41 = vld [vmem:[%s5131_s25 + $0x364] ss:$48 sps:$4 sm:$0xff]   ;;  %v3848_v43 = vld.sshfl [vmem:[%s5740_s0] sm:$0x33 pattern:$0x75316420] }
  0x81   : > { %2415 = vmatpush1.bf16.msra.mxu1 %v4325_v19  ;;  %2375 = vmatprep.subr.bf16.mxu0 %v4326_v20  ;;  %v4352_v44 = vld [vmem:[%s5131_s25 + $0x964] ss:$48 sps:$4 sm:$0xff]   ;;  %v661_v45 = vcombine.high %v3848_v43, %v3848_v43  ;;  %v4354_v46 = vld [vmem:[%s5131_s25 + $0x360] ss:$48 sps:$4 sm:$0xff]   ;;  %v5199_v57 = vrot.slane %v3848_v43, %v667_v42  ;;  %v4398_v18 = vld [vmem:[%s5131_s25 + $0x1e8] ss:$48 sps:$4 sm:$0xff]  }
  0x82   : > { %2416 = vmatprep.subr.bf16.mxu1 %v4328_v21  ;;  %v4355_v48 = vld [vmem:[%s5131_s25 + $0x960] ss:$48 sps:$4 sm:$0xff]   ;;  %v4356_v49 = vld [vmem:[%s5131_s25 + $0x3c4] ss:$48 sps:$4 sm:$0xff]   ;;  %v4401_v19 = vld [vmem:[%s5131_s25 + $0x668] ss:$48 sps:$4 sm:$0xff]  }
  0x83   : > { %v5182_v47 = vrot.slane %v661_v45, %v667_v42  ;;  %v4358_v50 = vld [vmem:[%s5131_s25 + $0x9c4] ss:$48 sps:$4 sm:$0xff]   ;;  %v4360_v52 = vld [vmem:[%s5131_s25 + $0x3c0] ss:$48 sps:$4 sm:$0xff]   ;;  %v5206_v61 = vcombine.high %v5199_v57, %v5199_v57  ;;  %v4406_v20 = vld [vmem:[%s5131_s25 + $0x24c] ss:$48 sps:$4 sm:$0xff]  }
  0x84   : > { %2376 = vmatpush1.bf16.msra.mxu0 %v4330_v22  ;;  %v4361_v53 = vld [vmem:[%s5131_s25 + $0x9c0] ss:$48 sps:$4 sm:$0xff]   ;;  %v4362_v54 = vld [vmem:[%s5131_s25 + $0x424] ss:$48 sps:$4 sm:$0xff]   ;;  %v4409_v21 = vld [vmem:[%s5131_s25 + $0x6cc] ss:$48 sps:$4 sm:$0xff]  }
  0x85   : > { %2417 = vmatpush1.bf16.msra.mxu1 %v4331_v23  ;;  %2377 = vmatprep.subr.bf16.mxu0 %v4332_v24  ;;  %v5189_v51 = vcombine.high %v5182_v47, %v5182_v47  ;;  %v4364_v55 = vld [vmem:[%s5131_s25 + $0xa24] ss:$48 sps:$4 sm:$0xff]   ;;  %v4366_v56 = vld [vmem:[%s5131_s25 + $0x420] ss:$48 sps:$4 sm:$0xff]   ;;  %v4404_v22 = vld [vmem:[%s5131_s25 + $0x248] ss:$48 sps:$4 sm:$0xff]  }
  0x86   : > { %2418 = vmatprep.subr.bf16.mxu1 %v4334_v25  ;;  %2397 = vmatprep.mubr.bf16.mxu0 %v5182_v47  ;;  %v4367_v58 = vld [vmem:[%s5131_s25 + $0xa20] ss:$48 sps:$4 sm:$0xff]   ;;  %v4368_v59 = vld [vmem:[%s5131_s25 + $0x484] ss:$48 sps:$4 sm:$0xff]   ;;  %v4407_v23 = vld [vmem:[%s5131_s25 + $0x6c8] ss:$48 sps:$4 sm:$0xff]  }
  0x87   : > { %4185 = vmatprep.mubr.msk.bf16.mxu1 %vm2361_vm0, %v5189_v51  ;;  %v4373_v63 = vld [vmem:[%s5131_s25 + $0x480] ss:$48 sps:$4 sm:$0xff]   ;;  %v4374_v0 = vld [vmem:[%s5131_s25 + $0x4e4] ss:$48 sps:$4 sm:$0xff]   ;;  %v4412_v24 = vld [vmem:[%s5131_s25 + $0x2ac] ss:$48 sps:$4 sm:$0xff]  }
  0x88   : > { %2378 = vmatpush1.bf16.msra.mxu0 %v4336_v26  ;;  %v4379_v3 = vld [vmem:[%s5131_s25 + $0x4e0] ss:$48 sps:$4 sm:$0xff]   ;;  %v4380_v4 = vld [vmem:[%s5131_s25 + $0x544] ss:$48 sps:$4 sm:$0xff]   ;;  %v4415_v25 = vld [vmem:[%s5131_s25 + $0x72c] ss:$48 sps:$4 sm:$0xff]  }
  0x89   : > { %2419 = vmatpush1.bf16.msra.mxu1 %v4337_v27  ;;  %2379 = vmatprep.subr.bf16.mxu0 %v4338_v31  ;;  %v4385_v7 = vld [vmem:[%s5131_s25 + $0x540] ss:$48 sps:$4 sm:$0xff]   ;;  %v4386_v8 = vld [vmem:[%s5131_s25 + $0x5a4] ss:$48 sps:$4 sm:$0xff]   ;;  %v4410_v26 = vld [vmem:[%s5131_s25 + $0x2a8] ss:$48 sps:$4 sm:$0xff]  }
  0x8a   : > { %2420 = vmatprep.subr.bf16.mxu1 %v4340_v32  ;;  %v4391_v11 = vld [vmem:[%s5131_s25 + $0x5a0] ss:$48 sps:$4 sm:$0xff]   ;;  %v4413_v27 = vld [vmem:[%s5131_s25 + $0x728] ss:$48 sps:$4 sm:$0xff]   ;;  %v4421_v29 = vld [vmem:[%s5131_s25 + $0x78c] ss:$48 sps:$4 sm:$0xff]  }
  0x8b   : > { %v4416_v30 = vld [vmem:[%s5131_s25 + $0x308] ss:$48 sps:$4 sm:$0xff]   ;;  %v4424_v32 = vld [vmem:[%s5131_s25 + $0x36c] ss:$48 sps:$4 sm:$0xff]   ;;  %s276_s29 = scalar_lea.vmem [#allocation6], %s3847_s7  ;;  %vm2958_vm1 = vcmask 1044480  }
  0x8c   : > { %2380 = vmatpush1.bf16.msra.mxu0 %v4342_v33  ;;  %v4419_v31 = vld [vmem:[%s5131_s25 + $0x788] ss:$48 sps:$4 sm:$0xff]   ;;  %v4427_v33 = vld [vmem:[%s5131_s25 + $0x7ec] ss:$48 sps:$4 sm:$0xff]   ;;  %vm2945_vm2 = vcmask 39936   ;;  %p5758_p8 = scmp.ne.s32.totalorder %s5750_s28, 0 }
  0x8d   : > { %2421 = vmatpush1.bf16.msra.mxu1 %v4343_v36  ;;  %2381 = vmatprep.subr.bf16.mxu0 %v4344_v37  ;;  %v4422_v34 = vld [vmem:[%s5131_s25 + $0x368] ss:$48 sps:$4 sm:$0xff]   ;;  %v4430_v37 = vld [vmem:[%s5131_s25 + $0x3cc] ss:$48 sps:$4 sm:$0xff]   ;;  %s4237_s17 = sshll.u32 (%p5758_p8), %s4987_s22, 3 }
  0x8e   : > { %2422 = vmatprep.subr.bf16.mxu1 %v4346_v38  ;;  %v4425_v36 = vld [vmem:[%s5131_s25 + $0x7e8] ss:$48 sps:$4 sm:$0xff]   ;;  %v4433_v38 = vld [vmem:[%s5131_s25 + $0x84c] ss:$48 sps:$4 sm:$0xff]   ;;  %s3689_s14 = scalar_lea.vmem (%p5758_p8), %s5745_s5, %s4237_s17 }
  0x8f   : > { %v4439_v42 = vld [vmem:[%s5131_s25 + $0x8ac] ss:$48 sps:$4 sm:$0xff]   ;;  %v4434_v43 = vld [vmem:[%s5131_s25 + $0x428] ss:$48 sps:$4 sm:$0xff]  }
  0x90   : > { %2382 = vmatpush1.bf16.msra.mxu0 %v4348_v39  ;;  %v4428_v39 = vld [vmem:[%s5131_s25 + $0x3c8] ss:$48 sps:$4 sm:$0xff]   ;;  %v4442_v45 = vld [vmem:[%s5131_s25 + $0x48c] ss:$48 sps:$4 sm:$0xff]  }
  0x91   : > { %2423 = vmatpush1.bf16.msra.mxu1 %v4349_v40  ;;  %2383 = vmatprep.subr.bf16.mxu0 %v4350_v41  ;;  %v4431_v40 = vld [vmem:[%s5131_s25 + $0x848] ss:$48 sps:$4 sm:$0xff]   ;;  %v4436_v41 = vld [vmem:[%s5131_s25 + $0x42c] ss:$48 sps:$4 sm:$0xff]  }
  0x92   : > { %2424 = vmatprep.subr.bf16.mxu1 %v4352_v44  ;;  %v4437_v44 = vld [vmem:[%s5131_s25 + $0x8a8] ss:$48 sps:$4 sm:$0xff]  }
  0x94   : > { %2384 = vmatpush1.bf16.msra.mxu0 %v4354_v46  ;;  %v4445_v46 = vld [vmem:[%s5131_s25 + $0x90c] ss:$48 sps:$4 sm:$0xff]  }
  0x95   : > { %2425 = vmatpush1.bf16.msra.mxu1 %v4355_v48  ;;  %2385 = vmatprep.subr.bf16.mxu0 %v4356_v49  ;;  %v4440_v48 = vld [vmem:[%s5131_s25 + $0x488] ss:$48 sps:$4 sm:$0xff]  }
  0x96   : > { %2426 = vmatprep.subr.bf16.mxu1 %v4358_v50  ;;  %v4443_v49 = vld [vmem:[%s5131_s25 + $0x908] ss:$48 sps:$4 sm:$0xff]   ;;  %v4448_v50 = vld [vmem:[%s5131_s25 + $0x4ec] ss:$48 sps:$4 sm:$0xff]  }
  0x98   : > { %2386 = vmatpush1.bf16.msra.mxu0 %v4360_v52  ;;  %v4451_v52 = vld [vmem:[%s5131_s25 + $0x96c] ss:$48 sps:$4 sm:$0xff]  }
  0x99   : > { %2427 = vmatpush1.bf16.msra.mxu1 %v4361_v53  ;;  %2387 = vmatprep.subr.bf16.mxu0 %v4362_v54  ;;  %v4446_v53 = vld [vmem:[%s5131_s25 + $0x4e8] ss:$48 sps:$4 sm:$0xff]  }
  0x9a   : > { %2428 = vmatprep.subr.bf16.mxu1 %v4364_v55  ;;  %v4449_v54 = vld [vmem:[%s5131_s25 + $0x968] ss:$48 sps:$4 sm:$0xff]   ;;  %v4454_v55 = vld [vmem:[%s5131_s25 + $0x54c] ss:$48 sps:$4 sm:$0xff]  }
  0x9c   : > { %2388 = vmatpush1.bf16.msra.mxu0 %v4366_v56  ;;  %v4457_v56 = vld [vmem:[%s5131_s25 + $0x9cc] ss:$48 sps:$4 sm:$0xff]  }
  0x9d   : > { %2429 = vmatpush1.bf16.msra.mxu1 %v4367_v58  ;;  %2389 = vmatprep.subr.bf16.mxu0 %v4368_v59  ;;  %v4452_v58 = vld [vmem:[%s5131_s25 + $0x548] ss:$48 sps:$4 sm:$0xff]  }
  0x9e   : > { %2447 = vmatprep.subr.bf16.mxu1 %v4372_v60  ;;  %v4455_v59 = vld [vmem:[%s5131_s25 + $0x9c8] ss:$48 sps:$4 sm:$0xff]   ;;  %v4460_v60 = vld [vmem:[%s5131_s25 + $0x5ac] ss:$48 sps:$4 sm:$0xff]  }
  0xa0   : > { %2439 = vmatmul.mubr.bf16.vlgmr.msra.gmra.mrb[0].mxu1 %v5206_v61  ;;  %2390 = vmatpush1.bf16.msra.mxu0 %v4373_v63  ;;  %v4458_v63 = vld [vmem:[%s5131_s25 + $0x5a8] ss:$48 sps:$4 sm:$0xff]  }
  0xa1   : > { %2448 = vmatpush1.bf16.msra.mxu1 %v4370_v62  ;;  %2391 = vmatprep.subr.bf16.mxu0 %v4374_v0  ;;  %v4463_v62 = vld [vmem:[%s5131_s25 + $0xa2c] ss:$48 sps:$4 sm:$0xff]   ;;  %v4461_v0 = vld [vmem:[%s5131_s25 + $0xa28] ss:$48 sps:$4 sm:$0xff]  }
  0xa2   : > { %2449 = vmatprep.subr.bf16.mxu1 %v4378_v1  ;;  %2479 = vmatprep.mubr.bf16.mxu1 %v5182_v47  ;;  %v4466_v1 = vld [vmem:[%s5131_s25 + $0x14] ss:$48 sps:$4 sm:$0xff]  }
  0xa4   : > { %2392 = vmatpush1.bf16.msra.mxu0 %v4379_v3  ;;  %v4464_v3 = vld [vmem:[%s5131_s25 + $0x10] ss:$48 sps:$4 sm:$0xff]  }
  0xa5   : > { %2450 = vmatpush1.bf16.msra.mxu1 %v4376_v2  ;;  %2393 = vmatprep.subr.bf16.mxu0 %v4380_v4  ;;  %v4469_v2 = vld [vmem:[%s5131_s25 + $0x614] ss:$48 sps:$4 sm:$0xff]   ;;  %v4467_v4 = vld [vmem:[%s5131_s25 + $0x610] ss:$48 sps:$4 sm:$0xff]  }
  0xa6   : > { %2451 = vmatprep.subr.bf16.mxu1 %v4384_v5  ;;  %v4472_v5 = vld [vmem:[%s5131_s25 + $0x74] ss:$48 sps:$4 sm:$0xff]  }
  0xa8   : > { %2394 = vmatpush1.bf16.msra.mxu0 %v4385_v7  ;;  %v4470_v7 = vld [vmem:[%s5131_s25 + $0x70] ss:$48 sps:$4 sm:$0xff]  }
  0xa9   : > { %2452 = vmatpush1.bf16.msra.mxu1 %v4382_v6  ;;  %2395 = vmatprep.subr.bf16.mxu0 %v4386_v8  ;;  %v4475_v6 = vld [vmem:[%s5131_s25 + $0x674] ss:$48 sps:$4 sm:$0xff]   ;;  %v4473_v8 = vld [vmem:[%s5131_s25 + $0x670] ss:$48 sps:$4 sm:$0xff]  }
  0xaa   : > { %2453 = vmatprep.subr.bf16.mxu1 %v4390_v9  ;;  %v4478_v9 = vld [vmem:[%s5131_s25 + $0xd4] ss:$48 sps:$4 sm:$0xff]  }
  0xac   : > { %2396 = vmatpush1.bf16.msra.mxu0 %v4391_v11  ;;  %v4476_v11 = vld [vmem:[%s5131_s25 + $0xd0] ss:$48 sps:$4 sm:$0xff]  }
  0xad   : > { %2454 = vmatpush1.bf16.msra.mxu1 %v4388_v10  ;;  %2488 = vmatprep.subr.bf16.mxu0 %v4397_v13  ;;  %v4481_v10 = vld [vmem:[%s5131_s25 + $0x6d4] ss:$48 sps:$4 sm:$0xff]  }
  0xae   : > { %2455 = vmatprep.subr.bf16.mxu1 %v4394_v12  ;;  %v4479_v12 = vld [vmem:[%s5131_s25 + $0x6d0] ss:$48 sps:$4 sm:$0xff]   ;;  %v4484_v13 = vld [vmem:[%s5131_s25 + $0x134] ss:$48 sps:$4 sm:$0xff]  }
  0xaf   : > { %2398 = vmatmul.mubr.bf16.vlgmr.msra.gmra.mrb[0].mxu0 %v5199_v57 }
  0xb0   : > { %2489 = vmatpush1.bf16.msra.mxu0 %v4395_v15  ;;  %4186 = vmatprep.mubr.msk.bf16.mxu0 %vm2361_vm0, %v5189_v51  ;;  %v4482_v15 = vld [vmem:[%s5131_s25 + $0x130] ss:$48 sps:$4 sm:$0xff]  }
  0xb1   : > { %2456 = vmatpush1.bf16.msra.mxu1 %v4392_v14  ;;  %2490 = vmatprep.subr.bf16.mxu0 %v4403_v17  ;;  %v4487_v14 = vld [vmem:[%s5131_s25 + $0x734] ss:$48 sps:$4 sm:$0xff]  }
  0xb2   : > { %2457 = vmatprep.subr.bf16.mxu1 %v4400_v16  ;;  %v4485_v16 = vld [vmem:[%s5131_s25 + $0x730] ss:$48 sps:$4 sm:$0xff]   ;;  %v4490_v17 = vld [vmem:[%s5131_s25 + $0x194] ss:$48 sps:$4 sm:$0xff]  }
  0xb4   : > { %2491 = vmatpush1.bf16.msra.mxu0 %v4401_v19  ;;  %v4488_v19 = vld [vmem:[%s5131_s25 + $0x190] ss:$48 sps:$4 sm:$0xff]  }
  0xb5   : > { %2458 = vmatpush1.bf16.msra.mxu1 %v4398_v18  ;;  %2492 = vmatprep.subr.bf16.mxu0 %v4409_v21  ;;  %v4493_v18 = vld [vmem:[%s5131_s25 + $0x794] ss:$48 sps:$4 sm:$0xff]  }
  0xb6   : > { %2459 = vmatprep.subr.bf16.mxu1 %v4406_v20  ;;  %v4491_v20 = vld [vmem:[%s5131_s25 + $0x790] ss:$48 sps:$4 sm:$0xff]   ;;  %v4496_v21 = vld [vmem:[%s5131_s25 + $0x1f4] ss:$48 sps:$4 sm:$0xff]  }
  0xb8   : > { %2493 = vmatpush1.bf16.msra.mxu0 %v4407_v23  ;;  %v4494_v23 = vld [vmem:[%s5131_s25 + $0x1f0] ss:$48 sps:$4 sm:$0xff]  }
  0xb9   : > { %2460 = vmatpush1.bf16.msra.mxu1 %v4404_v22  ;;  %2494 = vmatprep.subr.bf16.mxu0 %v4415_v25  ;;  %v4499_v22 = vld [vmem:[%s5131_s25 + $0x7f4] ss:$48 sps:$4 sm:$0xff]  }
  0xba   : > { %2461 = vmatprep.subr.bf16.mxu1 %v4412_v24  ;;  %v4497_v24 = vld [vmem:[%s5131_s25 + $0x7f0] ss:$48 sps:$4 sm:$0xff]   ;;  %v4502_v25 = vld [vmem:[%s5131_s25 + $0x254] ss:$48 sps:$4 sm:$0xff]  }
  0xbc   : > { %2495 = vmatpush1.bf16.msra.mxu0 %v4413_v27  ;;  %v4500_v27 = vld [vmem:[%s5131_s25 + $0x250] ss:$48 sps:$4 sm:$0xff]  }
  0xbd   : > { %2462 = vmatpush1.bf16.msra.mxu1 %v4410_v26  ;;  %2496 = vmatprep.subr.bf16.mxu0 %v4421_v29  ;;  %v4505_v26 = vld [vmem:[%s5131_s25 + $0x854] ss:$48 sps:$4 sm:$0xff]  }
  0xbe   : > { %2463 = vmatprep.subr.bf16.mxu1 %v4418_v28  ;;  %v4503_v28 = vld [vmem:[%s5131_s25 + $0x850] ss:$48 sps:$4 sm:$0xff]   ;;  %v4508_v29 = vld [vmem:[%s5131_s25 + $0x2b4] ss:$48 sps:$4 sm:$0xff]  }
  0xc0   : > { %2497 = vmatpush1.bf16.msra.mxu0 %v4419_v31  ;;  %v4506_v31 = vld [vmem:[%s5131_s25 + $0x2b0] ss:$48 sps:$4 sm:$0xff]  }
  0xc1   : > { %2464 = vmatpush1.bf16.msra.mxu1 %v4416_v30  ;;  %2498 = vmatprep.subr.bf16.mxu0 %v4427_v33  ;;  %v4511_v30 = vld [vmem:[%s5131_s25 + $0x8b4] ss:$48 sps:$4 sm:$0xff]  }
  0xc2   : > { %2465 = vmatprep.subr.bf16.mxu1 %v4424_v32  ;;  %v4509_v32 = vld [vmem:[%s5131_s25 + $0x8b0] ss:$48 sps:$4 sm:$0xff]   ;;  %v4514_v33 = vld [vmem:[%s5131_s25 + $0x314] ss:$48 sps:$4 sm:$0xff]  }
  0xc4   : > { %2499 = vmatpush1.bf16.msra.mxu0 %v4425_v36  ;;  %v4512_v36 = vld [vmem:[%s5131_s25 + $0x310] ss:$48 sps:$4 sm:$0xff]  }
  0xc5   : > { %2466 = vmatpush1.bf16.msra.mxu1 %v4422_v34  ;;  %2500 = vmatprep.subr.bf16.mxu0 %v4433_v38  ;;  %v4517_v34 = vld [vmem:[%s5131_s25 + $0x914] ss:$48 sps:$4 sm:$0xff]  }
  0xc6   : > { %2467 = vmatprep.subr.bf16.mxu1 %v4430_v37  ;;  %v4515_v37 = vld [vmem:[%s5131_s25 + $0x910] ss:$48 sps:$4 sm:$0xff]   ;;  %v4520_v38 = vld [vmem:[%s5131_s25 + $0x374] ss:$48 sps:$4 sm:$0xff]  }
  0xc8   : > { %2501 = vmatpush1.bf16.msra.mxu0 %v4431_v40  ;;  %v4518_v40 = vld [vmem:[%s5131_s25 + $0x370] ss:$48 sps:$4 sm:$0xff]  }
  0xc9   : > { %2468 = vmatpush1.bf16.msra.mxu1 %v4428_v39  ;;  %2502 = vmatprep.subr.bf16.mxu0 %v4439_v42  ;;  %v4523_v39 = vld [vmem:[%s5131_s25 + $0x974] ss:$48 sps:$4 sm:$0xff]  }
  0xca   : > { %2469 = vmatprep.subr.bf16.mxu1 %v4436_v41  ;;  %v4521_v41 = vld [vmem:[%s5131_s25 + $0x970] ss:$48 sps:$4 sm:$0xff]   ;;  %v4526_v42 = vld [vmem:[%s5131_s25 + $0x3d4] ss:$48 sps:$4 sm:$0xff]  }
  0xcc   : > { %2503 = vmatpush1.bf16.msra.mxu0 %v4437_v44  ;;  %v4524_v44 = vld [vmem:[%s5131_s25 + $0x3d0] ss:$48 sps:$4 sm:$0xff]  }
  0xcd   : > { %2470 = vmatpush1.bf16.msra.mxu1 %v4434_v43  ;;  %2504 = vmatprep.subr.bf16.mxu0 %v4445_v46  ;;  %v4529_v43 = vld [vmem:[%s5131_s25 + $0x9d4] ss:$48 sps:$4 sm:$0xff]  }
  0xce   : > { %2471 = vmatprep.subr.bf16.mxu1 %v4442_v45  ;;  %v4527_v45 = vld [vmem:[%s5131_s25 + $0x9d0] ss:$48 sps:$4 sm:$0xff]   ;;  %v4532_v46 = vld [vmem:[%s5131_s25 + $0x434] ss:$48 sps:$4 sm:$0xff]  }
  0xd0   : > { %2505 = vmatpush1.bf16.msra.mxu0 %v4443_v49  ;;  %v4530_v49 = vld [vmem:[%s5131_s25 + $0x430] ss:$48 sps:$4 sm:$0xff]  }
  0xd1   : > { %2472 = vmatpush1.bf16.msra.mxu1 %v4440_v48  ;;  %2506 = vmatprep.subr.bf16.mxu0 %v4451_v52  ;;  %v4535_v48 = vld [vmem:[%s5131_s25 + $0xa34] ss:$48 sps:$4 sm:$0xff]  }
  0xd2   : > { %2473 = vmatprep.subr.bf16.mxu1 %v4448_v50  ;;  %v4533_v50 = vld [vmem:[%s5131_s25 + $0xa30] ss:$48 sps:$4 sm:$0xff]   ;;  %v4538_v52 = vld [vmem:[%s5131_s25 + $0x494] ss:$48 sps:$4 sm:$0xff]  }
  0xd4   : > { %2507 = vmatpush1.bf16.msra.mxu0 %v4449_v54  ;;  %v4536_v54 = vld [vmem:[%s5131_s25 + $0x490] ss:$48 sps:$4 sm:$0xff]  }
  0xd5   : > { %2474 = vmatpush1.bf16.msra.mxu1 %v4446_v53  ;;  %2508 = vmatprep.subr.bf16.mxu0 %v4457_v56  ;;  %v4541_v53 = vld [vmem:[%s5131_s25 + $0x1c] ss:$48 sps:$4 sm:$0xff]   ;;  %v4544_v56 = vld [vmem:[%s5131_s25 + $0x4f4] ss:$48 sps:$4 sm:$0xff]  }
  0xd6   : > { %2475 = vmatprep.subr.bf16.mxu1 %v4454_v55  ;;  %v4539_v55 = vld [vmem:[%s5131_s25 + $0x18] ss:$48 sps:$4 sm:$0xff]  }
  0xd8   : > { %2509 = vmatpush1.bf16.msra.mxu0 %v4455_v59  ;;  %v4542_v59 = vld [vmem:[%s5131_s25 + $0x4f0] ss:$48 sps:$4 sm:$0xff]  }
  0xd9   : > { %2476 = vmatpush1.bf16.msra.mxu1 %v4452_v58  ;;  %2510 = vmatprep.subr.bf16.mxu0 %v4463_v62  ;;  %v4547_v58 = vld [vmem:[%s5131_s25 + $0x7c] ss:$48 sps:$4 sm:$0xff]   ;;  %v4550_v62 = vld [vmem:[%s5131_s25 + $0x554] ss:$48 sps:$4 sm:$0xff]  }
  0xda   : > { %2477 = vmatprep.subr.bf16.mxu1 %v4460_v60  ;;  %v4545_v60 = vld [vmem:[%s5131_s25 + $0x78] ss:$48 sps:$4 sm:$0xff]  }
  0xdc   : > { %2511 = vmatpush1.bf16.msra.mxu0 %v4461_v0  ;;  %v4548_v0 = vld [vmem:[%s5131_s25 + $0x550] ss:$48 sps:$4 sm:$0xff]  }
  0xdd   : > { %2478 = vmatpush1.bf16.msra.mxu1 %v4458_v63  ;;  %2529 = vmatprep.subr.bf16.mxu0 %v4466_v1  ;;  %v4553_v63 = vld [vmem:[%s5131_s25 + $0xdc] ss:$48 sps:$4 sm:$0xff]   ;;  %v4551_v1 = vld [vmem:[%s5131_s25 + $0xd8] ss:$48 sps:$4 sm:$0xff]  }
  0xde   : > { %2570 = vmatprep.subr.bf16.mxu1 %v4469_v2  ;;  %v4556_v2 = vld [vmem:[%s5131_s25 + $0x5b4] ss:$48 sps:$4 sm:$0xff]  }
  0xdf   : > { %2521 = vmatmul.mubr.bf16.vlgmr.msra.gmra.mrb[4].mxu0 %v5206_v61 }
  0xe0   : > { %2480 = vmatmul.mubr.bf16.vlgmr.msra.gmra.mrb[4].mxu1 %v5199_v57  ;;  %2530 = vmatpush1.bf16.msra.mxu0 %v4464_v3  ;;  %v4559_v3 = vld [vmem:[%s5131_s25 + $0x13c] ss:$48 sps:$4 sm:$0xff]  }
  0xe1   : > { %2571 = vmatpush1.bf16.msra.mxu1 %v4467_v4  ;;  %2531 = vmatprep.subr.bf16.mxu0 %v4472_v5  ;;  %v4554_v4 = vld [vmem:[%s5131_s25 + $0x5b0] ss:$48 sps:$4 sm:$0xff]   ;;  %v4557_v5 = vld [vmem:[%s5131_s25 + $0x138] ss:$48 sps:$4 sm:$0xff]  }
  0xe2   : > { %2572 = vmatprep.subr.bf16.mxu1 %v4475_v6  ;;  %4187 = vmatprep.mubr.msk.bf16.mxu1 %vm2361_vm0, %v5189_v51  ;;  %v4562_v6 = vld [vmem:[%s5131_s25 + $0x19c] ss:$48 sps:$4 sm:$0xff]  }
  0xe3   : > { %2561 = vmatprep.mubr.bf16.mxu0 %v5182_v47 }
  0xe4   : > { %2532 = vmatpush1.bf16.msra.mxu0 %v4470_v7  ;;  %v4565_v7 = vld [vmem:[%s5131_s25 + $0x61c] ss:$48 sps:$4 sm:$0xff]  }
  0xe5   : > { %2573 = vmatpush1.bf16.msra.mxu1 %v4473_v8  ;;  %2533 = vmatprep.subr.bf16.mxu0 %v4478_v9  ;;  %v4560_v8 = vld [vmem:[%s5131_s25 + $0x198] ss:$48 sps:$4 sm:$0xff]  }
  0xe6   : > { %2574 = vmatprep.subr.bf16.mxu1 %v4481_v10  ;;  %v4563_v9 = vld [vmem:[%s5131_s25 + $0x618] ss:$48 sps:$4 sm:$0xff]   ;;  %v4568_v10 = vld [vmem:[%s5131_s25 + $0x1fc] ss:$48 sps:$4 sm:$0xff]  }
  0xe8   : > { %2534 = vmatpush1.bf16.msra.mxu0 %v4476_v11  ;;  %v4571_v11 = vld [vmem:[%s5131_s25 + $0x67c] ss:$48 sps:$4 sm:$0xff]  }
  0xe9   : > { %2575 = vmatpush1.bf16.msra.mxu1 %v4479_v12  ;;  %2535 = vmatprep.subr.bf16.mxu0 %v4484_v13  ;;  %v4566_v12 = vld [vmem:[%s5131_s25 + $0x1f8] ss:$48 sps:$4 sm:$0xff]  }
  0xea   : > { %2576 = vmatprep.subr.bf16.mxu1 %v4487_v14  ;;  %v4569_v13 = vld [vmem:[%s5131_s25 + $0x678] ss:$48 sps:$4 sm:$0xff]   ;;  %v4574_v14 = vld [vmem:[%s5131_s25 + $0x25c] ss:$48 sps:$4 sm:$0xff]  }
  0xec   : > { %2536 = vmatpush1.bf16.msra.mxu0 %v4482_v15  ;;  %v4577_v15 = vld [vmem:[%s5131_s25 + $0x6dc] ss:$48 sps:$4 sm:$0xff]  }
  0xed   : > { %2577 = vmatpush1.bf16.msra.mxu1 %v4485_v16  ;;  %2537 = vmatprep.subr.bf16.mxu0 %v4490_v17  ;;  %v4572_v16 = vld [vmem:[%s5131_s25 + $0x258] ss:$48 sps:$4 sm:$0xff]  }
  0xee   : > { %2578 = vmatprep.subr.bf16.mxu1 %v4493_v18  ;;  %v4575_v17 = vld [vmem:[%s5131_s25 + $0x6d8] ss:$48 sps:$4 sm:$0xff]   ;;  %v4580_v18 = vld [vmem:[%s5131_s25 + $0x2bc] ss:$48 sps:$4 sm:$0xff]  }
  0xf0   : > { %2538 = vmatpush1.bf16.msra.mxu0 %v4488_v19  ;;  %v4583_v19 = vld [vmem:[%s5131_s25 + $0x73c] ss:$48 sps:$4 sm:$0xff]  }
  0xf1   : > { %2579 = vmatpush1.bf16.msra.mxu1 %v4491_v20  ;;  %2539 = vmatprep.subr.bf16.mxu0 %v4496_v21  ;;  %v4578_v20 = vld [vmem:[%s5131_s25 + $0x2b8] ss:$48 sps:$4 sm:$0xff]  }
  0xf2   : > { %2580 = vmatprep.subr.bf16.mxu1 %v4499_v22  ;;  %v4581_v21 = vld [vmem:[%s5131_s25 + $0x738] ss:$48 sps:$4 sm:$0xff]   ;;  %v4586_v22 = vld [vmem:[%s5131_s25 + $0x31c] ss:$48 sps:$4 sm:$0xff]  }
  0xf4   : > { %2540 = vmatpush1.bf16.msra.mxu0 %v4494_v23  ;;  %v4589_v23 = vld [vmem:[%s5131_s25 + $0x79c] ss:$48 sps:$4 sm:$0xff]  }
  0xf5   : > { %2581 = vmatpush1.bf16.msra.mxu1 %v4497_v24  ;;  %2541 = vmatprep.subr.bf16.mxu0 %v4502_v25  ;;  %v4584_v24 = vld [vmem:[%s5131_s25 + $0x318] ss:$48 sps:$4 sm:$0xff]  }
  0xf6   : > { %2582 = vmatprep.subr.bf16.mxu1 %v4505_v26  ;;  %v4587_v25 = vld [vmem:[%s5131_s25 + $0x798] ss:$48 sps:$4 sm:$0xff]   ;;  %v4592_v26 = vld [vmem:[%s5131_s25 + $0x37c] ss:$48 sps:$4 sm:$0xff]  }
  0xf8   : > { %2542 = vmatpush1.bf16.msra.mxu0 %v4500_v27  ;;  %v4595_v27 = vld [vmem:[%s5131_s25 + $0x7fc] ss:$48 sps:$4 sm:$0xff]  }
  0xf9   : > { %2583 = vmatpush1.bf16.msra.mxu1 %v4503_v28  ;;  %2543 = vmatprep.subr.bf16.mxu0 %v4508_v29  ;;  %v4590_v28 = vld [vmem:[%s5131_s25 + $0x378] ss:$48 sps:$4 sm:$0xff]  }
  0xfa   : > { %2584 = vmatprep.subr.bf16.mxu1 %v4511_v30  ;;  %v4593_v29 = vld [vmem:[%s5131_s25 + $0x7f8] ss:$48 sps:$4 sm:$0xff]   ;;  %v4598_v30 = vld [vmem:[%s5131_s25 + $0x3dc] ss:$48 sps:$4 sm:$0xff]  }
  0xfc   : > { %2544 = vmatpush1.bf16.msra.mxu0 %v4506_v31  ;;  %v4601_v31 = vld [vmem:[%s5131_s25 + $0x85c] ss:$48 sps:$4 sm:$0xff]  }
  0xfd   : > { %2585 = vmatpush1.bf16.msra.mxu1 %v4509_v32  ;;  %2545 = vmatprep.subr.bf16.mxu0 %v4514_v33  ;;  %v4596_v32 = vld [vmem:[%s5131_s25 + $0x3d8] ss:$48 sps:$4 sm:$0xff]  }
  0xfe   : > { %2586 = vmatprep.subr.bf16.mxu1 %v4517_v34  ;;  %v4599_v33 = vld [vmem:[%s5131_s25 + $0x858] ss:$48 sps:$4 sm:$0xff]   ;;  %v4604_v34 = vld [vmem:[%s5131_s25 + $0x43c] ss:$48 sps:$4 sm:$0xff]  }
 0x100   : > { %2546 = vmatpush1.bf16.msra.mxu0 %v4512_v36  ;;  %v4607_v36 = vld [vmem:[%s5131_s25 + $0x8bc] ss:$48 sps:$4 sm:$0xff]  }
 0x101   : > { %2587 = vmatpush1.bf16.msra.mxu1 %v4515_v37  ;;  %2547 = vmatprep.subr.bf16.mxu0 %v4520_v38  ;;  %v4602_v37 = vld [vmem:[%s5131_s25 + $0x438] ss:$48 sps:$4 sm:$0xff]  }
 0x102   : > { %2588 = vmatprep.subr.bf16.mxu1 %v4523_v39  ;;  %v4605_v38 = vld [vmem:[%s5131_s25 + $0x8b8] ss:$48 sps:$4 sm:$0xff]   ;;  %v4610_v39 = vld [vmem:[%s5131_s25 + $0x49c] ss:$48 sps:$4 sm:$0xff]  }
 0x104   : > { %2548 = vmatpush1.bf16.msra.mxu0 %v4518_v40  ;;  %v4613_v40 = vld [vmem:[%s5131_s25 + $0x91c] ss:$48 sps:$4 sm:$0xff]  }
 0x105   : > { %2589 = vmatpush1.bf16.msra.mxu1 %v4521_v41  ;;  %2549 = vmatprep.subr.bf16.mxu0 %v4526_v42  ;;  %v4608_v41 = vld [vmem:[%s5131_s25 + $0x498] ss:$48 sps:$4 sm:$0xff]  }
 0x106   : > { %2590 = vmatprep.subr.bf16.mxu1 %v4529_v43  ;;  %v4611_v42 = vld [vmem:[%s5131_s25 + $0x918] ss:$48 sps:$4 sm:$0xff]   ;;  %v4616_v43 = vld [vmem:[%s5131_s25 + $0x4fc] ss:$48 sps:$4 sm:$0xff]  }
 0x108   : > { %2550 = vmatpush1.bf16.msra.mxu0 %v4524_v44  ;;  %v4619_v44 = vld [vmem:[%s5131_s25 + $0x97c] ss:$48 sps:$4 sm:$0xff]  }
 0x109   : > { %2591 = vmatpush1.bf16.msra.mxu1 %v4527_v45  ;;  %2551 = vmatprep.subr.bf16.mxu0 %v4532_v46  ;;  %v4614_v45 = vld [vmem:[%s5131_s25 + $0x4f8] ss:$48 sps:$4 sm:$0xff]  }
 0x10a   : > { %2592 = vmatprep.subr.bf16.mxu1 %v4535_v48  ;;  %v4617_v46 = vld [vmem:[%s5131_s25 + $0x978] ss:$48 sps:$4 sm:$0xff]   ;;  %v4622_v48 = vld [vmem:[%s5131_s25 + $0x55c] ss:$48 sps:$4 sm:$0xff]  }
 0x10c   : > { %2552 = vmatpush1.bf16.msra.mxu0 %v4530_v49  ;;  %v4625_v49 = vld [vmem:[%s5131_s25 + $0x9dc] ss:$48 sps:$4 sm:$0xff]  }
 0x10d   : > { %2593 = vmatpush1.bf16.msra.mxu1 %v4533_v50  ;;  %2553 = vmatprep.subr.bf16.mxu0 %v4538_v52  ;;  %v4620_v50 = vld [vmem:[%s5131_s25 + $0x558] ss:$48 sps:$4 sm:$0xff]  }
 0x10e   : > { %2611 = vmatprep.subr.bf16.mxu1 %v4541_v53  ;;  %v4623_v52 = vld [vmem:[%s5131_s25 + $0x9d8] ss:$48 sps:$4 sm:$0xff]   ;;  %v4628_v53 = vld [vmem:[%s5131_s25 + $0x5bc] ss:$48 sps:$4 sm:$0xff]  }
 0x110   : > { %2603 = vmatmul.mubr.bf16.vlgmr.msra.gmra.mrb[8].mxu1 %v5206_v61  ;;  %2554 = vmatpush1.bf16.msra.mxu0 %v4536_v54  ;;  %v4631_v54 = vld [vmem:[%s5131_s25 + $0xa3c] ss:$48 sps:$4 sm:$0xff]  }
 0x111   : > { %2612 = vmatpush1.bf16.msra.mxu1 %v4539_v55  ;;  %2555 = vmatprep.subr.bf16.mxu0 %v4544_v56  ;;  %v4626_v55 = vld [vmem:[%s5131_s25 + $0x5b8] ss:$48 sps:$4 sm:$0xff]  }
 0x112   : > { %2613 = vmatprep.subr.bf16.mxu1 %v4547_v58  ;;  %2643 = vmatprep.mubr.bf16.mxu1 %v5182_v47  ;;  %v4629_v56 = vld [vmem:[%s5131_s25 + $0xa38] ss:$48 sps:$4 sm:$0xff]   ;;  %v4634_v58 = vld [vmem:[%s5131_s25 + $0x24] ss:$48 sps:$4 sm:$0xff]  }
 0x114   : > { %2556 = vmatpush1.bf16.msra.mxu0 %v4542_v59  ;;  %v4637_v59 = vld [vmem:[%s5131_s25 + $0x624] ss:$48 sps:$4 sm:$0xff]  }
 0x115   : > { %2614 = vmatpush1.bf16.msra.mxu1 %v4545_v60  ;;  %2557 = vmatprep.subr.bf16.mxu0 %v4550_v62  ;;  %v4632_v60 = vld [vmem:[%s5131_s25 + $0x20] ss:$48 sps:$4 sm:$0xff]  }
 0x116   : > { %2615 = vmatprep.subr.bf16.mxu1 %v4553_v63  ;;  %v4635_v62 = vld [vmem:[%s5131_s25 + $0x620] ss:$48 sps:$4 sm:$0xff]   ;;  %v4640_v63 = vld [vmem:[%s5131_s25 + $0x84] ss:$48 sps:$4 sm:$0xff]  }
 0x118   : > { %2558 = vmatpush1.bf16.msra.mxu0 %v4548_v0  ;;  %v4643_v0 = vld [vmem:[%s5131_s25 + $0x684] ss:$48 sps:$4 sm:$0xff]  }
 0x119   : > { %2616 = vmatpush1.bf16.msra.mxu1 %v4551_v1  ;;  %2559 = vmatprep.subr.bf16.mxu0 %v4556_v2  ;;  %v4638_v1 = vld [vmem:[%s5131_s25 + $0x80] ss:$48 sps:$4 sm:$0xff]  }
 0x11a   : > { %2617 = vmatprep.subr.bf16.mxu1 %v4559_v3  ;;  %v4641_v2 = vld [vmem:[%s5131_s25 + $0x680] ss:$48 sps:$4 sm:$0xff]   ;;  %v4646_v3 = vld [vmem:[%s5131_s25 + $0xe4] ss:$48 sps:$4 sm:$0xff]  }
 0x11c   : > { %2560 = vmatpush1.bf16.msra.mxu0 %v4554_v4  ;;  %v4649_v4 = vld [vmem:[%s5131_s25 + $0x6e4] ss:$48 sps:$4 sm:$0xff]  }
 0x11d   : > { %2618 = vmatpush1.bf16.msra.mxu1 %v4557_v5  ;;  %2652 = vmatprep.subr.bf16.mxu0 %v4565_v7  ;;  %v4644_v5 = vld [vmem:[%s5131_s25 + $0xe0] ss:$48 sps:$4 sm:$0xff]   ;;  %v4652_v7 = vld [vmem:[%s5131_s25 + $0x144] ss:$48 sps:$4 sm:$0xff]  }
 0x11e   : > { %2619 = vmatprep.subr.bf16.mxu1 %v4562_v6  ;;  %v4647_v6 = vld [vmem:[%s5131_s25 + $0x6e0] ss:$48 sps:$4 sm:$0xff]  }
 0x11f   : > { %2562 = vmatmul.mubr.bf16.vlgmr.msra.gmra.mrb[8].mxu0 %v5199_v57 }
 0x120   : > { %2653 = vmatpush1.bf16.msra.mxu0 %v4563_v9  ;;  %4188 = vmatprep.mubr.msk.bf16.mxu0 %vm2361_vm0, %v5189_v51  ;;  %v4650_v9 = vld [vmem:[%s5131_s25 + $0x140] ss:$48 sps:$4 sm:$0xff]  }
 0x121   : > { %2620 = vmatpush1.bf16.msra.mxu1 %v4560_v8  ;;  %2654 = vmatprep.subr.bf16.mxu0 %v4571_v11  ;;  %v4655_v8 = vld [vmem:[%s5131_s25 + $0x744] ss:$48 sps:$4 sm:$0xff]  }
 0x122   : > { %2621 = vmatprep.subr.bf16.mxu1 %v4568_v10  ;;  %v4653_v10 = vld [vmem:[%s5131_s25 + $0x740] ss:$48 sps:$4 sm:$0xff]   ;;  %v4658_v11 = vld [vmem:[%s5131_s25 + $0x1a4] ss:$48 sps:$4 sm:$0xff]  }
 0x124   : > { %2655 = vmatpush1.bf16.msra.mxu0 %v4569_v13  ;;  %v4656_v13 = vld [vmem:[%s5131_s25 + $0x1a0] ss:$48 sps:$4 sm:$0xff]  }
 0x125   : > { %2622 = vmatpush1.bf16.msra.mxu1 %v4566_v12  ;;  %2656 = vmatprep.subr.bf16.mxu0 %v4577_v15  ;;  %v4661_v12 = vld [vmem:[%s5131_s25 + $0x7a4] ss:$48 sps:$4 sm:$0xff]  }
 0x126   : > { %2623 = vmatprep.subr.bf16.mxu1 %v4574_v14  ;;  %v4659_v14 = vld [vmem:[%s5131_s25 + $0x7a0] ss:$48 sps:$4 sm:$0xff]   ;;  %v4664_v15 = vld [vmem:[%s5131_s25 + $0x204] ss:$48 sps:$4 sm:$0xff]  }
 0x128   : > { %2657 = vmatpush1.bf16.msra.mxu0 %v4575_v17  ;;  %v4662_v17 = vld [vmem:[%s5131_s25 + $0x200] ss:$48 sps:$4 sm:$0xff]  }
 0x129   : > { %2624 = vmatpush1.bf16.msra.mxu1 %v4572_v16  ;;  %2658 = vmatprep.subr.bf16.mxu0 %v4583_v19  ;;  %v4667_v16 = vld [vmem:[%s5131_s25 + $0x804] ss:$48 sps:$4 sm:$0xff]  }
 0x12a   : > { %2625 = vmatprep.subr.bf16.mxu1 %v4580_v18  ;;  %v4665_v18 = vld [vmem:[%s5131_s25 + $0x800] ss:$48 sps:$4 sm:$0xff]   ;;  %v4670_v19 = vld [vmem:[%s5131_s25 + $0x264] ss:$48 sps:$4 sm:$0xff]  }
 0x12c   : > { %2659 = vmatpush1.bf16.msra.mxu0 %v4581_v21  ;;  %v4668_v21 = vld [vmem:[%s5131_s25 + $0x260] ss:$48 sps:$4 sm:$0xff]  }
 0x12d   : > { %2626 = vmatpush1.bf16.msra.mxu1 %v4578_v20  ;;  %2660 = vmatprep.subr.bf16.mxu0 %v4589_v23  ;;  %v4673_v20 = vld [vmem:[%s5131_s25 + $0x864] ss:$48 sps:$4 sm:$0xff]  }
 0x12e   : > { %2627 = vmatprep.subr.bf16.mxu1 %v4586_v22  ;;  %v4671_v22 = vld [vmem:[%s5131_s25 + $0x860] ss:$48 sps:$4 sm:$0xff]   ;;  %v4676_v23 = vld [vmem:[%s5131_s25 + $0x2c4] ss:$48 sps:$4 sm:$0xff]  }
 0x130   : > { %2661 = vmatpush1.bf16.msra.mxu0 %v4587_v25  ;;  %v4674_v25 = vld [vmem:[%s5131_s25 + $0x2c0] ss:$48 sps:$4 sm:$0xff]  }
 0x131   : > { %2628 = vmatpush1.bf16.msra.mxu1 %v4584_v24  ;;  %2662 = vmatprep.subr.bf16.mxu0 %v4595_v27  ;;  %v4679_v24 = vld [vmem:[%s5131_s25 + $0x8c4] ss:$48 sps:$4 sm:$0xff]  }
 0x132   : > { %2629 = vmatprep.subr.bf16.mxu1 %v4592_v26  ;;  %v4677_v26 = vld [vmem:[%s5131_s25 + $0x8c0] ss:$48 sps:$4 sm:$0xff]   ;;  %v4682_v27 = vld [vmem:[%s5131_s25 + $0x324] ss:$48 sps:$4 sm:$0xff]  }
 0x134   : > { %2663 = vmatpush1.bf16.msra.mxu0 %v4593_v29  ;;  %v4680_v29 = vld [vmem:[%s5131_s25 + $0x320] ss:$48 sps:$4 sm:$0xff]  }
 0x135   : > { %2630 = vmatpush1.bf16.msra.mxu1 %v4590_v28  ;;  %2664 = vmatprep.subr.bf16.mxu0 %v4601_v31  ;;  %v4685_v28 = vld [vmem:[%s5131_s25 + $0x924] ss:$48 sps:$4 sm:$0xff]  }
 0x136   : > { %2631 = vmatprep.subr.bf16.mxu1 %v4598_v30  ;;  %v4683_v30 = vld [vmem:[%s5131_s25 + $0x920] ss:$48 sps:$4 sm:$0xff]   ;;  %v4688_v31 = vld [vmem:[%s5131_s25 + $0x384] ss:$48 sps:$4 sm:$0xff]  }
 0x138   : > { %2665 = vmatpush1.bf16.msra.mxu0 %v4599_v33  ;;  %v4686_v33 = vld [vmem:[%s5131_s25 + $0x380] ss:$48 sps:$4 sm:$0xff]  }
 0x139   : > { %2632 = vmatpush1.bf16.msra.mxu1 %v4596_v32  ;;  %2666 = vmatprep.subr.bf16.mxu0 %v4607_v36  ;;  %v4691_v32 = vld [vmem:[%s5131_s25 + $0x984] ss:$48 sps:$4 sm:$0xff]  }
 0x13a   : > { %2633 = vmatprep.subr.bf16.mxu1 %v4604_v34  ;;  %v4689_v34 = vld [vmem:[%s5131_s25 + $0x980] ss:$48 sps:$4 sm:$0xff]   ;;  %v4694_v36 = vld [vmem:[%s5131_s25 + $0x3e4] ss:$48 sps:$4 sm:$0xff]  }
 0x13c   : > { %2667 = vmatpush1.bf16.msra.mxu0 %v4605_v38 }
 0x13d   : > { %2634 = vmatpush1.bf16.msra.mxu1 %v4602_v37  ;;  %2668 = vmatprep.subr.bf16.mxu0 %v4613_v40  ;;  %v4697_v37 = vld [vmem:[%s5131_s25 + $0x9e4] ss:$48 sps:$4 sm:$0xff]  }
 0x13e   : > { %2635 = vmatprep.subr.bf16.mxu1 %v4610_v39 }
 0x140   : > { %2669 = vmatpush1.bf16.msra.mxu0 %v4611_v42  ;;  %v4695_v42 = vld [vmem:[%s5131_s25 + $0x9e0] ss:$48 sps:$4 sm:$0xff]  }
 0x141   : > { %2636 = vmatpush1.bf16.msra.mxu1 %v4608_v41  ;;  %2670 = vmatprep.subr.bf16.mxu0 %v4619_v44  ;;  %v4692_v41 = vld [vmem:[%s5131_s25 + $0x3e0] ss:$48 sps:$4 sm:$0xff]   ;;  %v4700_v44 = vld [vmem:[%s5131_s25 + $0x444] ss:$48 sps:$4 sm:$0xff]  }
 0x142   : > { %2637 = vmatprep.subr.bf16.mxu1 %v4616_v43 }
 0x144   : > { %2671 = vmatpush1.bf16.msra.mxu0 %v4617_v46  ;;  %v4698_v46 = vld [vmem:[%s5131_s25 + $0x440] ss:$48 sps:$4 sm:$0xff]  }
 0x145   : > { %2638 = vmatpush1.bf16.msra.mxu1 %v4614_v45  ;;  %2672 = vmatprep.subr.bf16.mxu0 %v4625_v49  ;;  %v4703_v45 = vld [vmem:[%s5131_s25 + $0xa44] ss:$48 sps:$4 sm:$0xff]  }
 0x146   : > { %2639 = vmatprep.subr.bf16.mxu1 %v4622_v48  ;;  %v4701_v48 = vld [vmem:[%s5131_s25 + $0xa40] ss:$48 sps:$4 sm:$0xff]   ;;  %v4706_v49 = vld [vmem:[%s5131_s25 + $0x4a4] ss:$48 sps:$4 sm:$0xff]  }
 0x148   : > { %2673 = vmatpush1.bf16.msra.mxu0 %v4623_v52  ;;  %v4704_v52 = vld [vmem:[%s5131_s25 + $0x4a0] ss:$48 sps:$4 sm:$0xff]  }
 0x149   : > { %2640 = vmatpush1.bf16.msra.mxu1 %v4620_v50  ;;  %2674 = vmatprep.subr.bf16.mxu0 %v4631_v54  ;;  %v4709_v50 = vld [vmem:[%s5131_s25 + $0x2c] ss:$48 sps:$4 sm:$0xff]   ;;  %v4712_v54 = vld [vmem:[%s5131_s25 + $0x504] ss:$48 sps:$4 sm:$0xff]  }
 0x14a   : > { %2641 = vmatprep.subr.bf16.mxu1 %v4628_v53  ;;  %v4707_v53 = vld [vmem:[%s5131_s25 + $0x28] ss:$48 sps:$4 sm:$0xff]  }
 0x14c   : > { %2675 = vmatpush1.bf16.msra.mxu0 %v4629_v56  ;;  %v4710_v56 = vld [vmem:[%s5131_s25 + $0x500] ss:$48 sps:$4 sm:$0xff]  }
 0x14d   : > { %2642 = vmatpush1.bf16.msra.mxu1 %v4626_v55  ;;  %2693 = vmatprep.subr.bf16.mxu0 %v4634_v58  ;;  %v4715_v55 = vld [vmem:[%s5131_s25 + $0x8c] ss:$48 sps:$4 sm:$0xff]   ;;  %v4713_v58 = vld [vmem:[%s5131_s25 + $0x88] ss:$48 sps:$4 sm:$0xff]  }
 0x14e   : > { %2734 = vmatprep.subr.bf16.mxu1 %v4637_v59  ;;  %v4718_v59 = vld [vmem:[%s5131_s25 + $0x564] ss:$48 sps:$4 sm:$0xff]  }
 0x14f   : > { %2685 = vmatmul.mubr.bf16.vlgmr.msra.gmra.mrb[12].mxu0 %v5206_v61 }
 0x150   : > { %2644 = vmatmul.mubr.bf16.vlgmr.msra.gmra.mrb[12].mxu1 %v5199_v57  ;;  %2694 = vmatpush1.bf16.msra.mxu0 %v4632_v60  ;;  %v4721_v60 = vld [vmem:[%s5131_s25 + $0xec] ss:$48 sps:$4 sm:$0xff]  }
 0x151   : > { %2735 = vmatpush1.bf16.msra.mxu1 %v4635_v62  ;;  %2695 = vmatprep.subr.bf16.mxu0 %v4640_v63 }
 0x152   : > { %2736 = vmatprep.subr.bf16.mxu1 %v4643_v0  ;;  %4189 = vmatprep.mubr.msk.bf16.mxu1 %vm2361_vm0, %v5189_v51 }
 0x153   : > { %2725 = vmatprep.mubr.bf16.mxu0 %v5182_v47 }
 0x154   : > { %2696 = vmatpush1.bf16.msra.mxu0 %v4638_v1 }
 0x155   : > { %2737 = vmatpush1.bf16.msra.mxu1 %v4641_v2  ;;  %2697 = vmatprep.subr.bf16.mxu0 %v4646_v3  ;;  %v4716_v3 = vld [vmem:[%s5131_s25 + $0x560] ss:$48 sps:$4 sm:$0xff]  }
 0x156   : > { %2738 = vmatprep.subr.bf16.mxu1 %v4649_v4  ;;  %v4719_v4 = vld [vmem:[%s5131_s25 + $0xe8] ss:$48 sps:$4 sm:$0xff]  }
 0x158   : > { %2698 = vmatpush1.bf16.msra.mxu0 %v4644_v5 }
 0x159   : > { %2739 = vmatpush1.bf16.msra.mxu1 %v4647_v6  ;;  %2699 = vmatprep.subr.bf16.mxu0 %v4652_v7  ;;  %v4727_v6 = vld [vmem:[%s5131_s25 + $0x14c] ss:$48 sps:$4 sm:$0xff]   ;;  %v4722_v7 = vld [vmem:[%s5131_s25 + $0x5c0] ss:$48 sps:$4 sm:$0xff]  }
 0x15a   : > { %2740 = vmatprep.subr.bf16.mxu1 %v4655_v8  ;;  %v4725_v8 = vld [vmem:[%s5131_s25 + $0x148] ss:$48 sps:$4 sm:$0xff]  }
 0x15c   : > { %2700 = vmatpush1.bf16.msra.mxu0 %v4650_v9  ;;  %v4730_v9 = vld [vmem:[%s5131_s25 + $0x1ac] ss:$48 sps:$4 sm:$0xff]  }
 0x15d   : > { %2741 = vmatpush1.bf16.msra.mxu1 %v4653_v10  ;;  %2701 = vmatprep.subr.bf16.mxu0 %v4658_v11  ;;  %v4733_v10 = vld [vmem:[%s5131_s25 + $0x62c] ss:$48 sps:$4 sm:$0xff]   ;;  %v4728_v11 = vld [vmem:[%s5131_s25 + $0x1a8] ss:$48 sps:$4 sm:$0xff]  }
 0x15e   : > { %2742 = vmatprep.subr.bf16.mxu1 %v4661_v12  ;;  %v4731_v12 = vld [vmem:[%s5131_s25 + $0x628] ss:$48 sps:$4 sm:$0xff]  }
 0x160   : > { %2702 = vmatpush1.bf16.msra.mxu0 %v4656_v13  ;;  %v4736_v13 = vld [vmem:[%s5131_s25 + $0x20c] ss:$48 sps:$4 sm:$0xff]  }
 0x161   : > { %2743 = vmatpush1.bf16.msra.mxu1 %v4659_v14  ;;  %2703 = vmatprep.subr.bf16.mxu0 %v4664_v15  ;;  %v4739_v14 = vld [vmem:[%s5131_s25 + $0x68c] ss:$48 sps:$4 sm:$0xff]   ;;  %v4734_v15 = vld [vmem:[%s5131_s25 + $0x208] ss:$48 sps:$4 sm:$0xff]  }
 0x162   : > { %2744 = vmatprep.subr.bf16.mxu1 %v4667_v16  ;;  %v4737_v16 = vld [vmem:[%s5131_s25 + $0x688] ss:$48 sps:$4 sm:$0xff]  }
 0x164   : > { %2704 = vmatpush1.bf16.msra.mxu0 %v4662_v17  ;;  %v4742_v17 = vld [vmem:[%s5131_s25 + $0x26c] ss:$48 sps:$4 sm:$0xff]  }
 0x165   : > { %2745 = vmatpush1.bf16.msra.mxu1 %v4665_v18  ;;  %2705 = vmatprep.subr.bf16.mxu0 %v4670_v19  ;;  %v4745_v18 = vld [vmem:[%s5131_s25 + $0x6ec] ss:$48 sps:$4 sm:$0xff]   ;;  %v4740_v19 = vld [vmem:[%s5131_s25 + $0x268] ss:$48 sps:$4 sm:$0xff]  }
 0x166   : > { %2746 = vmatprep.subr.bf16.mxu1 %v4673_v20  ;;  %v4743_v20 = vld [vmem:[%s5131_s25 + $0x6e8] ss:$48 sps:$4 sm:$0xff]  }
 0x168   : > { %2706 = vmatpush1.bf16.msra.mxu0 %v4668_v21  ;;  %v4748_v21 = vld [vmem:[%s5131_s25 + $0x2cc] ss:$48 sps:$4 sm:$0xff]  }
 0x169   : > { %2747 = vmatpush1.bf16.msra.mxu1 %v4671_v22  ;;  %2707 = vmatprep.subr.bf16.mxu0 %v4676_v23  ;;  %v4751_v22 = vld [vmem:[%s5131_s25 + $0x74c] ss:$48 sps:$4 sm:$0xff]   ;;  %v4746_v23 = vld [vmem:[%s5131_s25 + $0x2c8] ss:$48 sps:$4 sm:$0xff]  }
 0x16a   : > { %2748 = vmatprep.subr.bf16.mxu1 %v4679_v24  ;;  %v4749_v24 = vld [vmem:[%s5131_s25 + $0x748] ss:$48 sps:$4 sm:$0xff]  }
 0x16c   : > { %2708 = vmatpush1.bf16.msra.mxu0 %v4674_v25  ;;  %v4757_v25 = vld [vmem:[%s5131_s25 + $0x7ac] ss:$48 sps:$4 sm:$0xff]  }
 0x16d   : > { %2749 = vmatpush1.bf16.msra.mxu1 %v4677_v26  ;;  %2709 = vmatprep.subr.bf16.mxu0 %v4682_v27  ;;  %v4752_v26 = vld [vmem:[%s5131_s25 + $0x328] ss:$48 sps:$4 sm:$0xff]  }
 0x16e   : > { %2750 = vmatprep.subr.bf16.mxu1 %v4685_v28  ;;  %v4755_v27 = vld [vmem:[%s5131_s25 + $0x7a8] ss:$48 sps:$4 sm:$0xff]   ;;  %v4760_v28 = vld [vmem:[%s5131_s25 + $0x38c] ss:$48 sps:$4 sm:$0xff]  }
 0x170   : > { %2710 = vmatpush1.bf16.msra.mxu0 %v4680_v29  ;;  %v4763_v29 = vld [vmem:[%s5131_s25 + $0x80c] ss:$48 sps:$4 sm:$0xff]  }
 0x171   : > { %2751 = vmatpush1.bf16.msra.mxu1 %v4683_v30  ;;  %2711 = vmatprep.subr.bf16.mxu0 %v4688_v31  ;;  %v4758_v30 = vld [vmem:[%s5131_s25 + $0x388] ss:$48 sps:$4 sm:$0xff]  }
 0x172   : > { %2752 = vmatprep.subr.bf16.mxu1 %v4691_v32  ;;  %v4761_v31 = vld [vmem:[%s5131_s25 + $0x808] ss:$48 sps:$4 sm:$0xff]   ;;  %v4766_v32 = vld [vmem:[%s5131_s25 + $0x3ec] ss:$48 sps:$4 sm:$0xff]  }
 0x173   : > { %v2440_v38 = vpop.f32.mrb[0].mxu1 }
 0x174   : > { %v2442_v39 = vpop.f32.mrb[1].mxu1  ;;  %2712 = vmatpush1.bf16.msra.mxu0 %v4686_v33  ;;  %v4769_v33 = vld [vmem:[%s5131_s25 + $0x86c] ss:$48 sps:$4 sm:$0xff]  }
 0x175   : > { %v2444_v40 = vpop.f32.mrb[2].mxu1  ;;  %2753 = vmatpush1.bf16.msra.mxu1 %v4689_v34  ;;  %2713 = vmatprep.subr.bf16.mxu0 %v4694_v36  ;;  %v4764_v34 = vld [vmem:[%s5131_s25 + $0x3e8] ss:$48 sps:$4 sm:$0xff]  }
 0x176   : > { %v2445_v43 = vpop.f32.mrb[3].mxu1  ;;  %2754 = vmatprep.subr.bf16.mxu1 %v4697_v37  ;;  %v4767_v36 = vld [vmem:[%s5131_s25 + $0x868] ss:$48 sps:$4 sm:$0xff]   ;;  %v4772_v37 = vld [vmem:[%s5131_s25 + $0x44c] ss:$48 sps:$4 sm:$0xff]  }
 0x177   : > { %v4773_v40 = vld [vmem:[%s5131_s25 + $0x8c8] ss:$48 sps:$4 sm:$0xff]  }
 0x178   : > { %2714 = vmatpush1.bf16.msra.mxu0 %v4692_v41  ;;  %v4778_v41 = vld [vmem:[%s5131_s25 + $0x4ac] ss:$48 sps:$4 sm:$0xff]   ;;  %v4776_v43 = vld [vmem:[%s5131_s25 + $0x4a8] ss:$48 sps:$4 sm:$0xff]  }
 0x179   : > { %2755 = vmatpush1.bf16.msra.mxu1 %v4695_v42  ;;  %2715 = vmatprep.subr.bf16.mxu0 %v4700_v44  ;;  %v4781_v42 = vld [vmem:[%s5131_s25 + $0x92c] ss:$48 sps:$4 sm:$0xff]   ;;  %v4779_v44 = vld [vmem:[%s5131_s25 + $0x928] ss:$48 sps:$4 sm:$0xff]  }
 0x17a   : > { %2756 = vmatprep.subr.bf16.mxu1 %v4703_v45  ;;  %v4784_v45 = vld [vmem:[%s5131_s25 + $0x50c] ss:$48 sps:$4 sm:$0xff]  }
 0x17c   : > { %2716 = vmatpush1.bf16.msra.mxu0 %v4698_v46  ;;  %v4787_v46 = vld [vmem:[%s5131_s25 + $0x98c] ss:$48 sps:$4 sm:$0xff]  }
 0x17d   : > { %2757 = vmatpush1.bf16.msra.mxu1 %v4701_v48  ;;  %2717 = vmatprep.subr.bf16.mxu0 %v4706_v49  ;;  %v4782_v48 = vld [vmem:[%s5131_s25 + $0x508] ss:$48 sps:$4 sm:$0xff]  }
 0x17e   : > { %2775 = vmatprep.subr.bf16.mxu1 %v4709_v50  ;;  %v4785_v49 = vld [vmem:[%s5131_s25 + $0x988] ss:$48 sps:$4 sm:$0xff]   ;;  %v4790_v50 = vld [vmem:[%s5131_s25 + $0x56c] ss:$48 sps:$4 sm:$0xff]  }
 0x180   : > { %2767 = vmatmul.mubr.bf16.vlgmr.msra.gmra.mrb[16].mxu1 %v5206_v61  ;;  %2718 = vmatpush1.bf16.msra.mxu0 %v4704_v52  ;;  %v4793_v52 = vld [vmem:[%s5131_s25 + $0x9ec] ss:$48 sps:$4 sm:$0xff]  }
 0x181   : > { %2776 = vmatpush1.bf16.msra.mxu1 %v4707_v53  ;;  %2719 = vmatprep.subr.bf16.mxu0 %v4712_v54 }
 0x182   : > { %2777 = vmatprep.subr.bf16.mxu1 %v4715_v55  ;;  %v2399_v62 = vpop.f32.mrb[0].mxu0  ;;  %2807 = vmatprep.mubr.bf16.mxu1 %v5182_v47  ;;  %v4724_v47 = vld [vmem:[%s5131_s25 + $0x5c4] ss:$48 sps:$4 sm:$0xff]  }
 0x183   : > { %v5462_v63 = vadd.f32 %v2440_v38, %v2399_v62  ;;  %v2401_v0 = vpop.f32.mrb[1].mxu0  ;;  %v4775_v38 = vld [vmem:[%s5131_s25 + $0x8cc] ss:$48 sps:$4 sm:$0xff]  }
 0x184   : > { %v5464_v1 = vadd.f32 %v2442_v39, %v2401_v0  ;;  %v2403_v2 = vpop.f32.mrb[2].mxu0  ;;  %2720 = vmatpush1.bf16.msra.mxu0 %v4710_v56  ;;  %v4770_v39 = vld [vmem:[%s5131_s25 + $0x448] ss:$48 sps:$4 sm:$0xff]  }
 0x185   : > { %2778 = vmatpush1.bf16.msra.mxu1 %v4713_v58  ;;  %v2404_v5 = vpop.f32.mrb[3].mxu0  ;;  %2721 = vmatprep.subr.bf16.mxu0 %v4718_v59  ;;  %v4788_v0 = vld [vmem:[%s5131_s25 + $0x568] ss:$48 sps:$4 sm:$0xff]  }
 0x186   : > { %2779 = vmatprep.subr.bf16.mxu1 %v4721_v60  ;;  %v4791_v2 = vld [vmem:[%s5131_s25 + $0x9e8] ss:$48 sps:$4 sm:$0xff]   ;;  %v4796_v5 = vld [vmem:[%s5131_s25 + $0x5cc] ss:$48 sps:$4 sm:$0xff]  }
 0x188   : > { %2722 = vmatpush1.bf16.msra.mxu0 %v4716_v3 }
 0x189   : > { %2780 = vmatpush1.bf16.msra.mxu1 %v4719_v4  ;;  %2723 = vmatprep.subr.bf16.mxu0 %v4724_v47  ;;  %v4799_v47 = vld [vmem:[%s5131_s25 + $0xa4c] ss:$48 sps:$4 sm:$0xff]  }
 0x18a   : > { %2781 = vmatprep.subr.bf16.mxu1 %v4727_v6  ;;  %v4794_v6 = vld [vmem:[%s5131_s25 + $0x5c8] ss:$48 sps:$4 sm:$0xff]  }
 0x18c   : > { %2724 = vmatpush1.bf16.msra.mxu0 %v4722_v7  ;;  %v4797_v7 = vld [vmem:[%s5131_s25 + $0xa48] ss:$48 sps:$4 sm:$0xff]  }
 0x18d   : > { %2782 = vmatpush1.bf16.msra.mxu1 %v4725_v8  ;;  %2816 = vmatprep.subr.bf16.mxu0 %v4733_v10  ;;  %v2938_v8 = vld [vmem:[%s276_s29 + $0x8] sm:$0x1f]  ;;  %v2937_v10 = vld [vmem:[%s276_s29] sm:$0x1f] }
 0x18e   : > { %2783 = vmatprep.subr.bf16.mxu1 %v4730_v9  ;;  %v2940_v9 = vld [vmem:[%s276_s29 + $0x18] sm:$0x1f] }
 0x18f   : > { %2726 = vmatmul.mubr.bf16.vlgmr.msra.gmra.mrb[16].mxu0 %v5199_v57 }
 0x190   : > { %2817 = vmatpush1.bf16.msra.mxu0 %v4731_v12  ;;  %4190 = vmatprep.mubr.msk.bf16.mxu0 %vm2361_vm0, %v5189_v51  ;;  %v4754_v51 = vld [vmem:[%s5131_s25 + $0x32c] ss:$48 sps:$4 sm:$0xff]   ;;  %v4936_v12 = vmov 0.0  }
 0x191   : > { %2784 = vmatpush1.bf16.msra.mxu1 %v4728_v11  ;;  %2818 = vmatprep.subr.bf16.mxu0 %v4739_v14  ;;  %v2939_v11 = vld [vmem:[%s276_s29 + $0x10] sm:$0x1f]  ;;  %v2944_v14 = vld [vmem:[%s5743_s3 + $0x18] sm:$0xff] }
 0x192   : > { %2785 = vmatprep.subr.bf16.mxu1 %v4736_v13  ;;  %v2941_v13 = vld [vmem:[%s5743_s3] sm:$0xff] }
 0x194   : > { %2819 = vmatpush1.bf16.msra.mxu0 %v4737_v16  ;;  %v3197_v16 = vld [vmem:[%s5743_s3 + $0x28] sm:$0xff] }
 0x195   : > { %2786 = vmatpush1.bf16.msra.mxu1 %v4734_v15  ;;  %2820 = vmatprep.subr.bf16.mxu0 %v4745_v18  ;;  %v3196_v15 = vld [vmem:[%s5743_s3 + $0x20] sm:$0xff]  ;;  %v3199_v18 = vld [vmem:[%s5743_s3 + $0x38] sm:$0xff] }
 0x196   : > { %2787 = vmatprep.subr.bf16.mxu1 %v4742_v17  ;;  %v3198_v17 = vld [vmem:[%s5743_s3 + $0x30] sm:$0xff] }
 0x198   : > { %2821 = vmatpush1.bf16.msra.mxu0 %v4743_v20 }
 0x199   : > { %2788 = vmatpush1.bf16.msra.mxu1 %v4740_v19  ;;  %2822 = vmatprep.subr.bf16.mxu0 %v4751_v22  ;;  %v3438_v22 = vld [vmem:[%s5743_s3 + $0x40] sm:$0xff] }
 0x19a   : > { %2789 = vmatprep.subr.bf16.mxu1 %v4748_v21 }
 0x19c   : > { %2823 = vmatpush1.bf16.msra.mxu0 %v4749_v24  ;;  %v3439_v24 = vld [vmem:[%s5743_s3 + $0x48] sm:$0xff] }
 0x19d   : > { %2790 = vmatpush1.bf16.msra.mxu1 %v4746_v23  ;;  %2824 = vmatprep.subr.bf16.mxu0 %v4757_v25  ;;  %v3441_v25 = vld [vmem:[%s5743_s3 + $0x58] sm:$0xff] }
 0x19e   : > { %2791 = vmatprep.subr.bf16.mxu1 %v4754_v51  ;;  %v3440_v51 = vld [vmem:[%s5743_s3 + $0x50] sm:$0xff] }
 0x1a0   : > { %2825 = vmatpush1.bf16.msra.mxu0 %v4755_v27 }
 0x1a1   : > { %2792 = vmatpush1.bf16.msra.mxu1 %v4752_v26  ;;  %2826 = vmatprep.subr.bf16.mxu0 %v4763_v29 }
 0x1a2   : > { %2793 = vmatprep.subr.bf16.mxu1 %v4760_v28 }
 0x1a4   : > { %2827 = vmatpush1.bf16.msra.mxu0 %v4761_v31 }
 0x1a5   : > { %2794 = vmatpush1.bf16.msra.mxu1 %v4758_v30  ;;  %2828 = vmatprep.subr.bf16.mxu0 %v4769_v33 }
 0x1a6   : > { %2795 = vmatprep.subr.bf16.mxu1 %v4766_v32 }
 0x1a8   : > { %2829 = vmatpush1.bf16.msra.mxu0 %v4767_v36 }
 0x1a9   : > { %2796 = vmatpush1.bf16.msra.mxu1 %v4764_v34  ;;  %2830 = vmatprep.subr.bf16.mxu0 %v4775_v38 }
 0x1aa   : > { %2797 = vmatprep.subr.bf16.mxu1 %v4772_v37 }
 0x1ac   : > { %2831 = vmatpush1.bf16.msra.mxu0 %v4773_v40 }
 0x1ad   : > { %2798 = vmatpush1.bf16.msra.mxu1 %v4770_v39  ;;  %2832 = vmatprep.subr.bf16.mxu0 %v4781_v42 }
 0x1ae   : > { %2799 = vmatprep.subr.bf16.mxu1 %v4778_v41 }
 0x1b0   : > { %2833 = vmatpush1.bf16.msra.mxu0 %v4779_v44 }
 0x1b1   : > { %2800 = vmatpush1.bf16.msra.mxu1 %v4776_v43  ;;  %2834 = vmatprep.subr.bf16.mxu0 %v4787_v46 }
 0x1b2   : > { %2801 = vmatprep.subr.bf16.mxu1 %v4784_v45  ;;  %v2522_v54 = vpop.f32.mrb[4].mxu0 }
 0x1b3   : > { %v2481_v53 = vpop.f32.mrb[4].mxu1  ;;  %v2524_v58 = vpop.f32.mrb[5].mxu0 }
 0x1b4   : > { %v5517_v55 = vadd.f32 %v2522_v54, %v2481_v53  ;;  %v2483_v56 = vpop.f32.mrb[5].mxu1  ;;  %v2526_v62 = vpop.f32.mrb[6].mxu0  ;;  %2835 = vmatpush1.bf16.msra.mxu0 %v4785_v49 }
 0x1b5   : > { %v5520_v59 = vadd.f32 %v2524_v58, %v2483_v56  ;;  %v2485_v60 = vpop.f32.mrb[6].mxu1  ;;  %2802 = vmatpush1.bf16.msra.mxu1 %v4782_v48  ;;  %v2527_v4 = vpop.f32.mrb[7].mxu0  ;;  %2836 = vmatprep.subr.bf16.mxu0 %v4793_v52  ;;  %v2861_v56 = vsub.s32 0, %v5168_v35  ;;  %v2865_v58 = vsub.s32 1, %v5168_v35 }
 0x1b6   : > { %v2486_v3 = vpop.f32.mrb[7].mxu1  ;;  %2803 = vmatprep.subr.bf16.mxu1 %v4790_v50  ;;  %v2869_v60 = vsub.s32 2, %v5168_v35  ;;  %v2857_v62 = vld [vmem:[%s5123_s8] ss:$4 sm:$0xf] }
 0x1b8   : > { %2837 = vmatpush1.bf16.msra.mxu0 %v4791_v2 }
 0x1b9   : > { %2804 = vmatpush1.bf16.msra.mxu1 %v4788_v0  ;;  %2838 = vmatprep.subr.bf16.mxu0 %v4799_v47  ;;  %v2873_v0 = vsub.s32 3, %v5168_v35 }
 0x1ba   : > { %2805 = vmatprep.subr.bf16.mxu1 %v4796_v5 }
 0x1bc   : > { %2839 = vmatpush1.bf16.msra.mxu0 %v4797_v7 }
 0x1bd   : > { %2806 = vmatpush1.bf16.msra.mxu1 %v4794_v6  ;;  %4193 = vmatprep.subr.msk.mxu0 %vm2958_vm1, %v2938_v8 }
 0x1be   : > { %4199 = vmatprep.subr.msk.mxu1 %vm2958_vm1, %v2940_v9 }
 0x1bf   : > { %2849 = vmatmul.mubr.bf16.vlgmr.msra.gmra.mrb[20].mxu0 %v5206_v61  ;;  %v2943_v61 = vld [vmem:[%s5743_s3 + $0x10] sm:$0xff] }
 0x1c0   : > { %2808 = vmatmul.mubr.bf16.vlgmr.msra.gmra.mrb[20].mxu1 %v5199_v57  ;;  %4194 = vmatpush1.msk.msra.mxu0 %vm2958_vm1, %v2937_v10  ;;  %v2942_v57 = vld [vmem:[%s5743_s3 + $0x8] sm:$0xff] }
 0x1c1   : > { %4200 = vmatpush1.msk.msra.mxu1 %vm2958_vm1, %v2939_v11  ;;  %3035 = vmatprep.mubr.f32.mxu0 %v4936_v12 }
 0x1c2   : > { %3124 = vmatprep.mubr.f32.mxu1 %v4936_v12  ;;  %4205 = vmatprep.subr.msk.mxu0 %vm2958_vm1, %v2938_v8 }
 0x1c3   : > { %4211 = vmatprep.subr.msk.mxu1 %vm2958_vm1, %v2940_v9 }
 0x1c7   : > { %4195 = vmatmul.mubr.msk.f32.vlgmr.msra.gmra.mrb[24].mxu0 %vm2945_vm2, %v2941_v13 }
 0x1c8   : > { %4201 = vmatmul.mubr.msk.f32.vlgmr.msra.gmra.mrb[24].mxu1 %vm2945_vm2, %v2941_v13  ;;  %4206 = vmatpush1.msk.msra.mxu0 %vm2958_vm1, %v2937_v10  ;;  %v2866_v13 = vrot.slane %v2857_v62, %v2865_v58 }
 0x1c9   : > { %4212 = vmatpush1.msk.msra.mxu1 %vm2958_vm1, %v2939_v11  ;;  %3041 = vmatprep.mubr.f32.mxu0 %v4936_v12 }
 0x1ca   : > { %3130 = vmatprep.mubr.f32.mxu1 %v4936_v12  ;;  %4218 = vmatprep.subr.msk.mxu0 %vm2958_vm1, %v2938_v8 }
 0x1cb   : > { %4224 = vmatprep.subr.msk.mxu1 %vm2958_vm1, %v2940_v9  ;;  %4196 = vmatmul.mubr.msk.f32.gmra.mrb[26].mxu0 %vm2945_vm2, %v2942_v57  ;;  %v2862_v9 = vrot.slane %v2857_v62, %v2861_v56 }
 0x1cc   : > { %4202 = vmatmul.mubr.msk.f32.gmra.mrb[26].mxu1 %vm2945_vm2, %v2942_v57  ;;  %3047 = vmatprep.mubr.f32.mxu0 %v4936_v12  ;;  %v2874_v57 = vrot.slane %v2857_v62, %v2873_v0 }
 0x1cd   : > { %3136 = vmatprep.mubr.f32.mxu1 %v4936_v12 }
 0x1cf   : > { %4197 = vmatmul.mubr.msk.f32.gmra.mrb[28].mxu0 %vm2945_vm2, %v2943_v61 }
 0x1d0   : > { %4203 = vmatmul.mubr.msk.f32.gmra.mrb[28].mxu1 %vm2945_vm2, %v2943_v61  ;;  %3053 = vmatprep.mubr.f32.mxu0 %v4936_v12  ;;  %v4191_v61 = vld [vmem:[%s5123_s8 + $0x1] ss:$4 sm:$0xf] }
 0x1d1   : > { %3142 = vmatprep.mubr.f32.mxu1 %v4936_v12 }
 0x1d3   : > { %4198 = vmatmul.mubr.msk.f32.gmra.mrb[30].mxu0 %vm2945_vm2, %v2944_v14 }
 0x1d4   : > { %4204 = vmatmul.mubr.msk.f32.gmra.mrb[30].mxu1 %vm2945_vm2, %v2944_v14  ;;  %3276 = vmatprep.mubr.f32.mxu0 %v4936_v12  ;;  %v5637_v14 = vadd.f32 %v2862_v9, %v5462_v63 }
 0x1d5   : > { %3365 = vmatprep.mubr.f32.mxu1 %v4936_v12 }
 0x1d7   : > { %4207 = vmatmul.mubr.msk.f32.vlgmr.msra.gmra.mrb[32].mxu0 %vm2945_vm2, %v3196_v15 }
 0x1d8   : > { %4213 = vmatmul.mubr.msk.f32.vlgmr.msra.gmra.mrb[32].mxu1 %vm2945_vm2, %v3196_v15  ;;  %4219 = vmatpush1.msk.msra.mxu0 %vm2958_vm1, %v2937_v10  ;;  %v2870_v10 = vrot.slane %v2857_v62, %v2869_v60 }
 0x1d9   : > { %4225 = vmatpush1.msk.msra.mxu1 %vm2958_vm1, %v2939_v11  ;;  %3282 = vmatprep.mubr.f32.mxu0 %v4936_v12 }
 0x1da   : > { %3371 = vmatprep.mubr.f32.mxu1 %v4936_v12  ;;  %v5640_v15 = vadd.f32 %v2870_v10, %v5517_v55 }
 0x1db   : > { %4208 = vmatmul.mubr.msk.f32.gmra.mrb[34].mxu0 %vm2945_vm2, %v3197_v16 }
 0x1dc   : > { %4214 = vmatmul.mubr.msk.f32.gmra.mrb[34].mxu1 %vm2945_vm2, %v3197_v16  ;;  %3288 = vmatprep.mubr.f32.mxu0 %v4936_v12  ;;  %v2889_v16 = vrot.slane %v4191_v61, %v2861_v56 }
 0x1dd   : > { %3377 = vmatprep.mubr.f32.mxu1 %v4936_v12 }
 0x1df   : > { %4209 = vmatmul.mubr.msk.f32.gmra.mrb[36].mxu0 %vm2945_vm2, %v3198_v17 }
 0x1e0   : > { %4215 = vmatmul.mubr.msk.f32.gmra.mrb[36].mxu1 %vm2945_vm2, %v3198_v17  ;;  %3294 = vmatprep.mubr.f32.mxu0 %v4936_v12  ;;  %v2897_v17 = vrot.slane %v4191_v61, %v2869_v60 }
 0x1e1   : > { %3383 = vmatprep.mubr.f32.mxu1 %v4936_v12 }
 0x1e3   : > { %v2604_v19 = vpop.f32.mrb[8].mxu1  ;;  %4210 = vmatmul.mubr.msk.f32.gmra.mrb[38].mxu0 %vm2945_vm2, %v3199_v18 }
 0x1e4   : > { %v2606_v20 = vpop.f32.mrb[9].mxu1  ;;  %4216 = vmatmul.mubr.msk.f32.gmra.mrb[38].mxu1 %vm2945_vm2, %v3199_v18  ;;  %3518 = vmatprep.mubr.f32.mxu0 %v4936_v12  ;;  %v5643_v18 = vadd.f32 %v2866_v13, %v5464_v1 }
 0x1e5   : > { %v2608_v21 = vpop.f32.mrb[10].mxu1  ;;  %3607 = vmatprep.mubr.f32.mxu1 %v4936_v12 }
 0x1e6   : > { %v2609_v23 = vpop.f32.mrb[11].mxu1  ;;  %v2901_v21 = vrot.slane %v4191_v61, %v2873_v0 }
 0x1e7   : > { %4220 = vmatmul.mubr.msk.f32.vlgmr.msra.gmra.mrb[40].mxu0 %vm2945_vm2, %v3438_v22 }
 0x1e8   : > { %4226 = vmatmul.mubr.msk.f32.vlgmr.msra.gmra.mrb[40].mxu1 %vm2945_vm2, %v3438_v22  ;;  %3524 = vmatprep.mubr.f32.mxu0 %v4936_v12  ;;  %v4192_v22 = vld [vmem:[%s5123_s8 + $0x2] ss:$4 sm:$0xf]  ;;  %s4241_s8 = smul.u32 24, %s5119_s16 }
 0x1e9   : > { %3613 = vmatprep.mubr.f32.mxu1 %v4936_v12 }
 0x1ea   : > { %s5695_s16 = scalar_lea.vmem [#allocation7], %s4241_s8 }
 0x1eb   : > { %4221 = vmatmul.mubr.msk.f32.gmra.mrb[42].mxu0 %vm2945_vm2, %v3439_v24 }
 0x1ec   : > { %4227 = vmatmul.mubr.msk.f32.gmra.mrb[42].mxu1 %vm2945_vm2, %v3439_v24  ;;  %3530 = vmatprep.mubr.f32.mxu0 %v4936_v12 }
 0x1ed   : > { %3619 = vmatprep.mubr.f32.mxu1 %v4936_v12 }
 0x1ef   : > { %4222 = vmatmul.mubr.msk.f32.gmra.mrb[44].mxu0 %vm2945_vm2, %v3440_v51 }
 0x1f0   : > { %4228 = vmatmul.mubr.msk.f32.gmra.mrb[44].mxu1 %vm2945_vm2, %v3440_v51  ;;  %3536 = vmatprep.mubr.f32.mxu0 %v4936_v12 }
 0x1f1   : > { %3625 = vmatprep.mubr.f32.mxu1 %v4936_v12 }
 0x1f2   : > { %v2563_v26 = vpop.f32.mrb[8].mxu0 }
 0x1f3   : > { %v5624_v27 = vadd.f32 %v2604_v19, %v2563_v26  ;;  %v2565_v28 = vpop.f32.mrb[9].mxu0  ;;  %4223 = vmatmul.mubr.msk.f32.gmra.mrb[46].mxu0 %vm2945_vm2, %v3441_v25  ;;  %v5646_v19 = vadd.f32 %v2874_v57, %v5520_v59 }
 0x1f4   : > { %4229 = vmatmul.mubr.msk.f32.gmra.mrb[46].mxu1 %vm2945_vm2, %v3441_v25  ;;  %v5628_v29 = vadd.f32 %v2606_v20, %v2565_v28  ;;  %v2567_v30 = vpop.f32.mrb[10].mxu0  ;;  %v2893_v20 = vrot.slane %v4191_v61, %v2865_v58 }
 0x1f5   : > { %v2568_v31 = vpop.f32.mrb[11].mxu0  ;;  %v5654_v1 = vadd.f32 %v2889_v16, %v5624_v27  ;;  %v2916_v30 = vrot.slane %v4192_v22, %v2861_v56 }
 0x1f6   : > { %v2924_v31 = vrot.slane %v4192_v22, %v2869_v60 }
 0x222   : > { %v2686_v33 = vpop.f32.mrb[12].mxu0 }
 0x223   : > { %v2645_v32 = vpop.f32.mrb[12].mxu1  ;;  %v2688_v37 = vpop.f32.mrb[13].mxu0 }
 0x224   : > { %v2687_v34 = vadd.f32 %v2686_v33, %v2645_v32  ;;  %v2647_v36 = vpop.f32.mrb[13].mxu1  ;;  %v2690_v40 = vpop.f32.mrb[14].mxu0  ;;  %v5659_v32 = vadd.f32 %v2893_v20, %v5628_v29 }
 0x225   : > { %v2689_v38 = vadd.f32 %v2688_v37, %v2647_v36  ;;  %v2649_v39 = vpop.f32.mrb[14].mxu1  ;;  %v2691_v42 = vpop.f32.mrb[15].mxu0  ;;  %v2920_v36 = vrot.slane %v4192_v22, %v2865_v58  ;;  %v2928_v37 = vrot.slane %v4192_v22, %v2873_v0 }
 0x226   : > { %v2650_v41 = vpop.f32.mrb[15].mxu1  ;;  %v5656_v59 = vadd.f32 %v2897_v17, %v2687_v34 }
 0x227   : > { %v5661_v33 = vadd.f32 %v2901_v21, %v2689_v38 }
 0x253   : > { %v2768_v43 = vpop.f32.mrb[16].mxu1 }
 0x254   : > { %v2770_v44 = vpop.f32.mrb[17].mxu1 }
 0x255   : > { %v2772_v45 = vpop.f32.mrb[18].mxu1 }
 0x256   : > { %v2773_v46 = vpop.f32.mrb[19].mxu1 }
 0x262   : > { %v2727_v48 = vpop.f32.mrb[16].mxu0 }
 0x263   : > { %v2769_v49 = vadd.f32 %v2768_v43, %v2727_v48  ;;  %v2729_v50 = vpop.f32.mrb[17].mxu0 }
 0x264   : > { %v2771_v52 = vadd.f32 %v2770_v44, %v2729_v50  ;;  %v2731_v53 = vpop.f32.mrb[18].mxu0 }
 0x265   : > { %v2732_v54 = vpop.f32.mrb[19].mxu0  ;;  %v5667_v45 = vadd.f32 %v2916_v30, %v2769_v49  ;;  %v4937_v53 = vmov 1983009808  }
 0x266   : > { %v5671_v38 = vadd.f32 %v2920_v36, %v2771_v52  ;;  %v3180_v54 = vunpack.c.l.s4 %v4937_v53 }
 0x268   : > { %v3181_v52 = vunpack.c.0.s8 %v3180_v54 }
 0x292   : > { %v2850_v3 = vpop.f32.mrb[20].mxu0 }
 0x293   : > { %v2809_v2 = vpop.f32.mrb[20].mxu1  ;;  %v2852_v47 = vpop.f32.mrb[21].mxu0 }
 0x294   : > { %v2851_v4 = vadd.f32 %v2850_v3, %v2809_v2  ;;  %v2811_v5 = vpop.f32.mrb[21].mxu1  ;;  %v2854_v8 = vpop.f32.mrb[22].mxu0 }
 0x295   : > { %v2853_v6 = vadd.f32 %v2852_v47, %v2811_v5  ;;  %v2813_v7 = vpop.f32.mrb[22].mxu1  ;;  %v2855_v12 = vpop.f32.mrb[23].mxu0 }
 0x296   : > { %v2814_v11 = vpop.f32.mrb[23].mxu1  ;;  %v5669_v29 = vadd.f32 %v2924_v31, %v2851_v4  ;;  %v5680_v12 = vsub.s32 %v3181_v52, %v5168_v35 }
 0x297   : > { %v5673_v46 = vadd.f32 %v2928_v37, %v2853_v6 }
 0x29a   : > { %v3037_v23 = vpop.f32.mrb[24].mxu0 }
 0x29b   : > { %v3126_v24 = vpop.f32.mrb[24].mxu1  ;;  %v3149_v51 = vmul.f32 %v3037_v23, %v5637_v14  ;;  %v3039_v25 = vpop.f32.mrb[25].mxu0 }
 0x29c   : > { %v3151_v63 = vmul.f32 %v3126_v24, %v5640_v15  ;;  %v3128_v55 = vpop.f32.mrb[25].mxu1  ;;  %v3150_v26 = vmul.f32 %v3039_v25, %v5643_v18 }
 0x29d   : > { %v3152_v28 = vmul.f32 %v3128_v55, %v5646_v19 }
 0x29e   : > { %v3043_v39 = vpop.f32.mrb[26].mxu0 }
 0x29f   : > { %v3132_v40 = vpop.f32.mrb[26].mxu1  ;;  %v3157_v41 = vmul.f32 %v3043_v39, %v5654_v1  ;;  %v3045_v43 = vpop.f32.mrb[27].mxu0 }
 0x2a0   : > { %v3159_v42 = vmul.f32 %v3132_v40, %v5656_v59  ;;  %v3134_v27 = vpop.f32.mrb[27].mxu1  ;;  %v3158_v34 = vmul.f32 %v3045_v43, %v5659_v32 }
 0x2a1   : > { %v3160_v44 = vmul.f32 %v3134_v27, %v5661_v33 }
 0x2a2   : > { %v3049_v48 = vpop.f32.mrb[28].mxu0 }
 0x2a3   : > { %v3138_v50 = vpop.f32.mrb[28].mxu1  ;;  %v3165_v56 = vmul.f32 %v3049_v48, %v5667_v45  ;;  %v3051_v60 = vpop.f32.mrb[29].mxu0 }
 0x2a4   : > { %v3167_v58 = vmul.f32 %v3138_v50, %v5669_v29  ;;  %v3140_v62 = vpop.f32.mrb[29].mxu1  ;;  %v3166_v0 = vmul.f32 %v3051_v60, %v5671_v38 }
 0x2a5   : > { %v3168_v49 = vmul.f32 %v3140_v62, %v5673_v46 }
 0x2a6   : > { %v3055_v2 = vpop.f32.mrb[30].mxu0 }
 0x2a7   : > { %v3144_v3 = vpop.f32.mrb[30].mxu1  ;;  %v3153_v4 = vadd.f32 %v3149_v51, %v3055_v2  ;;  %v3057_v47 = vpop.f32.mrb[31].mxu0 }
 0x2a8   : > { %v3155_v5 = vadd.f32 %v3151_v63, %v3144_v3  ;;  %v3146_v6 = vpop.f32.mrb[31].mxu1  ;;  %v3154_v7 = vadd.f32 %v3150_v26, %v3057_v47 }
 0x2a9   : > { %v3156_v8 = vadd.f32 %v3152_v28, %v3146_v6  ;;  %v3161_v9 = vadd.f32 %v3157_v41, %v3153_v4 }
 0x2aa   : > { %v3163_v10 = vadd.f32 %v3159_v42, %v3155_v5  ;;  %v3162_v11 = vadd.f32 %v3158_v34, %v3154_v7  ;;  %v3278_v57 = vpop.f32.mrb[32].mxu0 }
 0x2ab   : > { %v3164_v13 = vadd.f32 %v3160_v44, %v3156_v8  ;;  %v3367_v61 = vpop.f32.mrb[32].mxu1  ;;  %v3169_v16 = vadd.f32 %v3165_v56, %v3161_v9  ;;  %v3390_v20 = vmul.f32 %v3278_v57, %v5637_v14  ;;  %v3280_v22 = vpop.f32.mrb[33].mxu0 }
 0x2ac   : > { %v3171_v17 = vadd.f32 %v3167_v58, %v3163_v10  ;;  %v3392_v21 = vmul.f32 %v3367_v61, %v5640_v15  ;;  %v3369_v23 = vpop.f32.mrb[33].mxu1  ;;  %v3170_v24 = vadd.f32 %v3166_v0, %v3162_v11  ;;  %v3391_v63 = vmul.f32 %v3280_v22, %v5643_v18 }
 0x2ad   : > { %v3172_v51 = vadd.f32 %v3168_v49, %v3164_v13  ;;  %v3393_v25 = vmul.f32 %v3369_v23, %v5646_v19 }
 0x2ae   : > { %v3177_v35 = vcombine.low %v3169_v16, %v3170_v24  ;;  %v3284_v26 = vpop.f32.mrb[34].mxu0 }
 0x2af   : > { %v3178_v55 = vcombine.low %v3171_v17, %v3172_v51  ;;  %v3373_v28 = vpop.f32.mrb[34].mxu1  ;;  %v3398_v30 = vmul.f32 %v3284_v26, %v5654_v1  ;;  %v3286_v36 = vpop.f32.mrb[35].mxu0 }
 0x2b0   : > { %v3400_v31 = vmul.f32 %v3373_v28, %v5656_v59  ;;  %v3375_v37 = vpop.f32.mrb[35].mxu1  ;;  %v3185_v39 = vrot.slane %v3177_v35, %v5680_v12  ;;  %v3399_v41 = vmul.f32 %v3286_v36, %v5659_v32 }
 0x2b1   : > { %v3192_v40 = vrot.slane %v3178_v55, %v5680_v12  ;;  %v3401_v42 = vmul.f32 %v3375_v37, %v5661_v33 }
 0x2b2   : > { %v3290_v27 = vpop.f32.mrb[36].mxu0 }
 0x2b3   : > { %v3193_v43 = vcombine.low %v3185_v39, %v3192_v40  ;;  %v3379_v34 = vpop.f32.mrb[36].mxu1  ;;  %v3406_v44 = vmul.f32 %v3290_v27, %v5667_v45  ;;  %v3292_v50 = vpop.f32.mrb[37].mxu0 }
 0x2b4   : > { %v3408_v48 = vmul.f32 %v3379_v34, %v5669_v29  ;;  %v3381_v53 = vpop.f32.mrb[37].mxu1  ;;  %v3407_v54 = vmul.f32 %v3292_v50, %v5671_v38 }
 0x2b5   : > { %3195 = vst [vmem:[%s5695_s16] sm:$0xff] %v3193_v43  ;;  %v3409_v56 = vmul.f32 %v3381_v53, %v5673_v46 }
 0x2b6   : > { %v3296_v58 = vpop.f32.mrb[38].mxu0 }
 0x2b7   : > { %v3385_v60 = vpop.f32.mrb[38].mxu1  ;;  %v3394_v62 = vadd.f32 %v3390_v20, %v3296_v58  ;;  %v3298_v49 = vpop.f32.mrb[39].mxu0 }
 0x2b8   : > { %v3396_v0 = vadd.f32 %v3392_v21, %v3385_v60  ;;  %v3387_v2 = vpop.f32.mrb[39].mxu1  ;;  %v3395_v3 = vadd.f32 %v3391_v63, %v3298_v49 }
 0x2b9   : > { %v3397_v52 = vadd.f32 %v3393_v25, %v3387_v2  ;;  %v3402_v4 = vadd.f32 %v3398_v30, %v3394_v62 }
 0x2ba   : > { %v3404_v5 = vadd.f32 %v3400_v31, %v3396_v0  ;;  %v3403_v47 = vadd.f32 %v3399_v41, %v3395_v3  ;;  %v3520_v7 = vpop.f32.mrb[40].mxu0 }
 0x2bb   : > { %v3405_v6 = vadd.f32 %v3401_v42, %v3397_v52  ;;  %v3609_v8 = vpop.f32.mrb[40].mxu1  ;;  %v3410_v9 = vadd.f32 %v3406_v44, %v3402_v4  ;;  %v3632_v11 = vmul.f32 %v3520_v7, %v5637_v14  ;;  %v3522_v57 = vpop.f32.mrb[41].mxu0 }
 0x2bc   : > { %v3412_v10 = vadd.f32 %v3408_v48, %v3404_v5  ;;  %v3634_v13 = vmul.f32 %v3609_v8, %v5640_v15  ;;  %v3611_v61 = vpop.f32.mrb[41].mxu1  ;;  %v3411_v16 = vadd.f32 %v3407_v54, %v3403_v47  ;;  %v3633_v20 = vmul.f32 %v3522_v57, %v5643_v18  ;;  %v3721_v0 = vld [vmem:[%s5695_s16] sm:$0xff] (%p5758_p8) }
 0x2bd   : > { %v3413_v17 = vadd.f32 %v3409_v56, %v3405_v6  ;;  %v3635_v21 = vmul.f32 %v3611_v61, %v5646_v19  ;;  %3722 = vst [vmem:[%s3689_s14] sm:$0xff] (%p5758_p8), %v3721_v0 }
 0x2be   : > { %v3418_v22 = vcombine.low %v3410_v9, %v3411_v16  ;;  %v3526_v24 = vpop.f32.mrb[42].mxu0 }
 0x2bf   : > { %v3419_v23 = vcombine.low %v3412_v10, %v3413_v17  ;;  %v3615_v51 = vpop.f32.mrb[42].mxu1  ;;  %v3640_v63 = vmul.f32 %v3526_v24, %v5654_v1  ;;  %v3528_v14 = vpop.f32.mrb[43].mxu0 }
 0x2c0   : > { %v3642_v25 = vmul.f32 %v3615_v51, %v5656_v59  ;;  %v3617_v35 = vpop.f32.mrb[43].mxu1  ;;  %v3426_v15 = vrot.slane %v3418_v22, %v5680_v12  ;;  %v3641_v26 = vmul.f32 %v3528_v14, %v5659_v32 }
 0x2c1   : > { %v3433_v55 = vrot.slane %v3419_v23, %v5680_v12  ;;  %v3643_v18 = vmul.f32 %v3617_v35, %v5661_v33 }
 0x2c2   : > { %v3532_v28 = vpop.f32.mrb[44].mxu0 }
 0x2c3   : > { %v3434_v19 = vcombine.low %v3426_v15, %v3433_v55  ;;  %v3621_v30 = vpop.f32.mrb[44].mxu1  ;;  %v3648_v31 = vmul.f32 %v3532_v28, %v5667_v45  ;;  %v3534_v1 = vpop.f32.mrb[45].mxu0 }
 0x2c4   : > { %v3650_v36 = vmul.f32 %v3621_v30, %v5669_v29  ;;  %v3623_v37 = vpop.f32.mrb[45].mxu1  ;;  %v3649_v59 = vmul.f32 %v3534_v1, %v5671_v38 }
 0x2c5   : > { %4217 = vst [vmem:[%s5695_s16 + $0x8] sm:$0xff] %v3434_v19  ;;  %v3651_v39 = vmul.f32 %v3623_v37, %v5673_v46 }
 0x2c6   : > { %v3538_v40 = vpop.f32.mrb[46].mxu0 }
 0x2c7   : > { %v3627_v41 = vpop.f32.mrb[46].mxu1  ;;  %v3636_v42 = vadd.f32 %v3632_v11, %v3538_v40  ;;  %v3540_v43 = vpop.f32.mrb[47].mxu0 }
 0x2c8   : > { %v3638_v32 = vadd.f32 %v3634_v13, %v3627_v41  ;;  %v3629_v33 = vpop.f32.mrb[47].mxu1  ;;  %v3637_v27 = vadd.f32 %v3633_v20, %v3540_v43 }
 0x2c9   : > { %v3639_v34 = vadd.f32 %v3635_v21, %v3629_v33  ;;  %v3644_v44 = vadd.f32 %v3640_v63, %v3636_v42 }
 0x2ca   : > { %v3646_v45 = vadd.f32 %v3642_v25, %v3638_v32  ;;  %v3645_v48 = vadd.f32 %v3641_v26, %v3637_v27 }
 0x2cb   : > { %v3647_v29 = vadd.f32 %v3643_v18, %v3639_v34  ;;  %v3652_v50 = vadd.f32 %v3648_v31, %v3644_v44 }
 0x2cc   : > { %v3654_v53 = vadd.f32 %v3650_v36, %v3646_v45  ;;  %v3653_v54 = vadd.f32 %v3649_v59, %v3645_v48  ;;  %v3723_v49 = vld [vmem:[%s5695_s16 + $0x8] sm:$0xff] (%p5758_p8) }
 0x2cd   : > { %v3655_v56 = vadd.f32 %v3651_v39, %v3647_v29  ;;  %3724 = vst [vmem:[%s3689_s14 + $0x10] sm:$0xff] (%p5758_p8), %v3723_v49 }
 0x2ce   : > { %v3660_v38 = vcombine.low %v3652_v50, %v3653_v54 }
 0x2cf   : > { %v3661_v58 = vcombine.low %v3654_v53, %v3655_v56  ;;  %3686 = sbr.rel (!%p5758_p8) target bundleno = 734 (0x2de), region = 56 }
 0x2d0   : > { %v3668_v46 = vrot.slane %v3660_v38, %v5680_v12 }
 0x2d1   : > { %v3675_v60 = vrot.slane %v3661_v58, %v5680_v12 }
 0x2d3   : > { %v3676_v62 = vcombine.low %v3668_v46, %v3675_v60 }
 0x2d5   : > { %4230 = vst [vmem:[%s5695_s16 + $0x10] sm:$0xff] %v3676_v62 }
 0x2dc   : > { %v3725_v2 = vld [vmem:[%s5695_s16 + $0x10] sm:$0xff] }
 0x2dd   : > { %3726 = vst [vmem:[%s3689_s14 + $0x20] sm:$0xff] %v3725_v2 }
 0x2de PF: > { %p18_p1 = scmp.ge.s32.totalorder %s4990_s23, 4   ;;  %s5759_s18 = smov %s4920_s19 }
 0x2df   : > { %s5760_s19 = smov %s4924_s20  ;;  %s5761_s20 = smov %s5000_s26 }
 0x2e0   : > { %s5762_s21 = smov %s4990_s23  ;;  %20 = sbr.rel (!%p18_p1) target bundleno = 5 (0x5), region = 146 }
 0x2e7   :  { %3742 = vsyncpa [#allocation3], 1 }
 0x2e8   :  { %3744 = vsyncpa [#allocation3 + $0x1], 1 }
 0x2e9   :  { %3745 = vsyncpa [#allocation5], 1 }
 0x2ea   :  { %3747 = vsyncpa [#allocation5 + $0x1], 1 }

</bundles_post_ra>
